<compile_context>
chip_gen: v6e
topology: v6e:2x2x1
jax: 0.10.0
libtpu: 0.0.40
codegen_flags: <defaults>
</compile_context>

<pallas_src>
import functools

import numpy as np
import jax
import jax.numpy as jnp
from jax.experimental import pallas as pl
from jax.experimental.pallas import tpu as pltpu


def _round_up(x, m):
    return (x + m - 1) // m * m


# ----------------------------------------------------------------------------
# One-time weight preprocessing (off the per-call path).
# A Conv2d is a linear map; materialize it as a dense matrix in NCHW-flattened
# coordinates:  row = ci*Hi*Wi + hi*Wi + wi,  col = co*Ho*Wo + ho*Wo + wo.
# Zero-padding is folded in (padded taps simply contribute nothing).
# ----------------------------------------------------------------------------
def conv_to_matrix(w, Hi, Wi, stride, pad):
    """w: (kh, kw, cin, cout) -> (cin*Hi*Wi, cout*Ho*Wo) dense matrix."""
    w = np.asarray(w, dtype=np.float32)
    k, _, Ci, Co = w.shape
    Ho = (Hi + 2 * pad - k) // stride + 1
    Wo = (Wi + 2 * pad - k) // stride + 1
    M = np.zeros((Ci * Hi * Wi, Co * Ho * Wo), dtype=np.float32)
    rows_c = np.arange(Ci) * (Hi * Wi)
    cols_c = np.arange(Co) * (Ho * Wo)
    for ho in range(Ho):
        for wo in range(Wo):
            col = cols_c + ho * Wo + wo
            for dh in range(k):
                hi = ho * stride + dh - pad
                if hi < 0 or hi >= Hi:
                    continue
                for dw in range(k):
                    wi = wo * stride + dw - pad
                    if wi < 0 or wi >= Wi:
                        continue
                    row = rows_c + hi * Wi + wi
                    M[np.ix_(row, col)] = w[dh, dw]          # (Ci, Co) block
    return M, Ho, Wo


def prepare_params(params, nc, H, W):
    """Pack conv weights into bf16 GEMM matrices + f32 expanded biases."""
    m1, H1, W1 = conv_to_matrix(params["w1"], H, W, stride=2, pad=1)
    m2, H2, W2 = conv_to_matrix(params["w2"], H1, W1, stride=2, pad=1)
    m3, H3, W3 = conv_to_matrix(params["w3"], H2, W2, stride=1, pad=0)
    assert H3 == 1 and W3 == 1, "final conv must reduce spatial dims to 1x1"

    n_out = m3.shape[1]                           # lambda_nz * nz
    n_out_pad = _round_up(max(n_out, 128), 128)   # lane-dense output width
    m3p = np.zeros((m3.shape[0], n_out_pad), np.float32)
    m3p[:, :n_out] = m3

    b1f = np.repeat(np.asarray(params["b1"], np.float32), H1 * W1)
    b2f = np.repeat(np.asarray(params["b2"], np.float32), H2 * W2)
    b3f = np.zeros((n_out_pad,), np.float32)
    b3f[:n_out] = np.asarray(params["b3"], np.float32)

    packed = {
        "m1": jnp.asarray(m1, jnp.bfloat16),
        "m2": jnp.asarray(m2, jnp.bfloat16),
        "m3": jnp.asarray(m3p, jnp.bfloat16),
        "b1": jnp.asarray(b1f.reshape(1, -1), jnp.float32),
        "b2": jnp.asarray(b2f.reshape(1, -1), jnp.float32),
        "b3": jnp.asarray(b3f.reshape(1, -1), jnp.float32),
    }
    return packed, n_out


# ----------------------------------------------------------------------------
# Fused encoder kernel: 3 chained GEMMs, bf16 operands, f32 accumulation,
# LeakyReLU between layers, VMEM-resident intermediates.
# ----------------------------------------------------------------------------
def _encoder_kernel(x_ref, m1_ref, b1_ref, m2_ref, b2_ref, m3_ref, b3_ref,
                    o_ref, h1_ref, h2_ref, *, slope):
    # layer 1: conv (unrolled) + bias + LeakyReLU
    y = jnp.dot(x_ref[...], m1_ref[...], preferred_element_type=jnp.float32)
    y = y + b1_ref[...]
    h1_ref[...] = jnp.where(y > 0, y, slope * y).astype(h1_ref.dtype)

    # layer 2
    y = jnp.dot(h1_ref[...], m2_ref[...], preferred_element_type=jnp.float32)
    y = y + b2_ref[...]
    h2_ref[...] = jnp.where(y > 0, y, slope * y).astype(h2_ref.dtype)

    # layer 3 (no activation: cfg.encoder.activation_name -> None)
    y = jnp.dot(h2_ref[...], m3_ref[...], preferred_element_type=jnp.float32)
    o_ref[...] = (y + b3_ref[...]).astype(o_ref.dtype)


@functools.partial(jax.jit, static_argnames=("n_out",))
def abstract_encoder_forward(x_nchw, packed, *, n_out):
    """AbstractEncoder.forward: returns latent-distribution params (B, n_out)."""
    B = x_nchw.shape[0]
    K1 = x_nchw.shape[1] * x_nchw.shape[2] * x_nchw.shape[3]
    # NCHW-flatten (matches the row ordering of the unrolled conv matrices);
    # cast input to bf16 once (halves DMA bytes; f32 accumulation in-kernel).
    x2d = x_nchw.reshape(B, K1).astype(jnp.bfloat16)

    # Batch tiling: sublane-aligned, capped so double-buffered in/out tiles +
    # resident weights stay far below VMEM limits on every chip.
    tile_b = min(256, _round_up(B, 8))
    B_pad = _round_up(B, tile_b)
    if B_pad != B:
        x2d = jnp.pad(x2d, ((0, B_pad - B), (0, 0)))

    m1, m2, m3 = packed["m1"], packed["m2"], packed["m3"]
    b1, b2, b3 = packed["b1"], packed["b2"], packed["b3"]
    N1, N2, N3 = m1.shape[1], m2.shape[1], m3.shape[1]

    flops = 2 * B_pad * (K1 * N1 + N1 * N2 + N2 * N3)
    bytes_accessed = (x2d.size * 2
                      + (m1.size + m2.size + m3.size) * 2
                      + (b1.size + b2.size + b3.size) * 4
                      + B_pad * N3 * 4)

    out = pl.pallas_call(
        functools.partial(_encoder_kernel, slope=0.2),
        out_shape=jax.ShapeDtypeStruct((B_pad, N3), jnp.float32),
        grid=(B_pad // tile_b,),
        in_specs=[
            pl.BlockSpec((tile_b, K1), lambda i: (i, 0)),   # x batch tile
            pl.BlockSpec((K1, N1), lambda i: (0, 0)),       # weights resident
            pl.BlockSpec((1, N1), lambda i: (0, 0)),
            pl.BlockSpec((N1, N2), lambda i: (0, 0)),
            pl.BlockSpec((1, N2), lambda i: (0, 0)),
            pl.BlockSpec((N2, N3), lambda i: (0, 0)),
            pl.BlockSpec((1, N3), lambda i: (0, 0)),
        ],
        out_specs=pl.BlockSpec((tile_b, N3), lambda i: (i, 0)),
        scratch_shapes=[                                    # VMEM intermediates
            pltpu.VMEM((tile_b, N1), jnp.bfloat16),
            pltpu.VMEM((tile_b, N2), jnp.bfloat16),
        ],
        compiler_params=pltpu.CompilerParams(
            dimension_semantics=("parallel",),              # megacore sharding
            vmem_limit_bytes=32 * 1024 * 1024,
        ),
        cost_estimate=pl.CostEstimate(
            flops=flops, transcendentals=0, bytes_accessed=bytes_accessed),
    )(x2d, m1, b1, m2, b2, m3, b3)

    # drop batch padding and the lane-padding of the last layer
    return out[:B, :n_out]


# ----------------------------------------------------------------------------
# Parameter init (stand-in for the PyTorch module's conv weights) + reference
# ----------------------------------------------------------------------------
def init_params(key, nc, nef, nz, lambda_nz):
    ks = jax.random.split(key, 6)
    scale = 0.05
    return {
        "w1": scale * jax.random.normal(ks[0], (4, 4, nc, nef), jnp.float32),
        "b1": scale * jax.random.normal(ks[1], (nef,), jnp.float32),
        "w2": scale * jax.random.normal(ks[2], (4, 4, nef, nef * 2), jnp.float32),
        "b2": scale * jax.random.normal(ks[3], (nef * 2,), jnp.float32),
        "w3": scale * jax.random.normal(ks[4], (4, 4, nef * 2, lambda_nz * nz),
                                        jnp.float32),
        "b3": scale * jax.random.normal(ks[5], (lambda_nz * nz,), jnp.float32),
    }


def reference_forward(x_nchw, params):
    """Pure-XLA reference (PyTorch-equivalent convs) for correctness check."""
    def conv(x, w, b, stride, pad):
        w_oihw = jnp.transpose(w, (3, 2, 0, 1))
        y = jax.lax.conv_general_dilated(
            x, w_oihw, window_strides=(stride, stride),
            padding=[(pad, pad), (pad, pad)],
            dimension_numbers=("NCHW", "OIHW", "NCHW"))
        return y + b.reshape(1, -1, 1, 1)

    lrelu = lambda t: jnp.where(t > 0, t, 0.2 * t)
    h = lrelu(conv(x_nchw, params["w1"], params["b1"], 2, 1))
    h = lrelu(conv(h, params["w2"], params["b2"], 2, 1))
    h = conv(h, params["w3"], params["b3"], 1, 0)
    return h.reshape(h.shape[0], -1)


if __name__ == "__main__":
    # Small deterministic config: batch=2, nc=4, 16x16 images,
    # nef=8, nz=8, lambda_nz=2 (e.g. Gaussian: mean + logvar).
    B, nc, H, W = 2, 4, 16, 16
    nef, nz, lambda_nz = 8, 8, 2

    key = jax.random.PRNGKey(0)
    k_x, k_p = jax.random.split(key)
    x = jax.random.normal(k_x, (B, nc, H, W), jnp.float32)   # NCHW, as in PyTorch
    params = init_params(k_p, nc, nef, nz, lambda_nz)

    # TODO(synk): cfg-driven choices (network_name / activation_name /
    # latent_distribution_name) are fixed here to the DCGAN conv encoder with
    # activation=None, per the module docstring.
    packed, n_out = prepare_params(params, nc, H, W)

    param_out = abstract_encoder_forward(x, packed, n_out=n_out)
    param_out = jax.block_until_ready(param_out)

    assert param_out.shape == (B, lambda_nz * nz), param_out.shape
    assert param_out.dtype == jnp.float32

    # numerical sanity check vs. the PyTorch-equivalent conv stack
    ref = jax.block_until_ready(reference_forward(x, params))
    max_err = float(jnp.max(jnp.abs(param_out - ref)))
    assert max_err < 2e-2, f"max abs err {max_err}"

    print("KERNEL_OK")
</pallas_src>

<mosaic_0001>
module attributes {stable_mosaic.version = 11 : i64} {
  func.func @_encoder_kernel(%arg0: i32, %arg1: memref<8x1024xbf16, #tpu.memory_space<vmem>>, %arg2: memref<1024x512xbf16, #tpu.memory_space<vmem>>, %arg3: memref<1x512xf32, #tpu.memory_space<vmem>>, %arg4: memref<512x256xbf16, #tpu.memory_space<vmem>>, %arg5: memref<1x256xf32, #tpu.memory_space<vmem>>, %arg6: memref<256x128xbf16, #tpu.memory_space<vmem>>, %arg7: memref<1x128xf32, #tpu.memory_space<vmem>>, %arg8: memref<8x128xf32, #tpu.memory_space<vmem>>, %arg9: memref<8x512xbf16, #tpu.memory_space<vmem>>, %arg10: memref<8x256xbf16, #tpu.memory_space<vmem>>) attributes {dimension_semantics = [#tpu.dimension_semantics<parallel>], iteration_bounds = array<i64: 1>, scalar_prefetch = 0 : i64, scratch_operands = 2 : i64, tpu.core_type = #tpu.core_type<tc>, window_params = [{transform_indices = @transform_0, window_bounds = array<i64: 8, 1024>}, {pipeline_mode = #tpu.pipeline_mode<synchronous>, transform_indices = @transform_1, window_bounds = array<i64: 1024, 512>}, {pipeline_mode = #tpu.pipeline_mode<synchronous>, transform_indices = @transform_2, window_bounds = array<i64: 1, 512>}, {pipeline_mode = #tpu.pipeline_mode<synchronous>, transform_indices = @transform_3, window_bounds = array<i64: 512, 256>}, {pipeline_mode = #tpu.pipeline_mode<synchronous>, transform_indices = @transform_4, window_bounds = array<i64: 1, 256>}, {pipeline_mode = #tpu.pipeline_mode<synchronous>, transform_indices = @transform_5, window_bounds = array<i64: 256, 128>}, {pipeline_mode = #tpu.pipeline_mode<synchronous>, transform_indices = @transform_6, window_bounds = array<i64: 1, 128>}, {transform_indices = @transform_7, window_bounds = array<i64: 8, 128>}]} {
    %c0 = arith.constant 0 : index
    %c0_0 = arith.constant 0 : index
    %0 = vector.load %arg1[%c0, %c0_0] : memref<8x1024xbf16, #tpu.memory_space<vmem>>, vector<8x1024xbf16>
    %c0_1 = arith.constant 0 : index
    %c0_2 = arith.constant 0 : index
    %1 = vector.load %arg2[%c0_1, %c0_2] : memref<1024x512xbf16, #tpu.memory_space<vmem>>, vector<1024x512xbf16>
    %cst = arith.constant dense<0.000000e+00> : vector<8x512xf32>
    %2 = tpu.matmul %0, %1, %cst {dimension_numbers = #tpu.dot_dimension_numbers<[1], [0], [0], [1], [0, 0, 1, 1], [], []>} : vector<8x1024xbf16>, vector<1024x512xbf16>, vector<8x512xf32> -> vector<8x512xf32>
    %c0_3 = arith.constant 0 : index
    %c0_4 = arith.constant 0 : index
    %3 = vector.load %arg3[%c0_3, %c0_4] : memref<1x512xf32, #tpu.memory_space<vmem>>, vector<1x512xf32>
    %4 = vector.broadcast %3 : vector<1x512xf32> to vector<8x512xf32>
    %5 = arith.addf %2, %4 : vector<8x512xf32>
    %cst_5 = arith.constant 0.000000e+00 : f32
    %6 = vector.broadcast %cst_5 : f32 to vector<8x512xf32>
    %7 = arith.cmpf ogt, %5, %6 : vector<8x512xf32>
    %cst_6 = arith.constant 2.000000e-01 : f32
    %8 = vector.broadcast %cst_6 : f32 to vector<8x512xf32>
    %9 = arith.mulf %8, %5 : vector<8x512xf32>
    %10 = arith.select %7, %5, %9 : vector<8x512xi1>, vector<8x512xf32>
    %11 = arith.truncf %10 : vector<8x512xf32> to vector<8x512xbf16>
    %c0_7 = arith.constant 0 : index
    %c0_8 = arith.constant 0 : index
    %12 = vector.load %arg9[%c0_7, %c0_8] : memref<8x512xbf16, #tpu.memory_space<vmem>>, vector<8x512xbf16>
    tpu.vector_store %arg9[%c0_7, %c0_8], %11 {strides = array<i32>} : memref<8x512xbf16, #tpu.memory_space<vmem>>, vector<8x512xbf16>,
    %c0_9 = arith.constant 0 : index
    %c0_10 = arith.constant 0 : index
    %13 = vector.load %arg9[%c0_9, %c0_10] : memref<8x512xbf16, #tpu.memory_space<vmem>>, vector<8x512xbf16>
    %c0_11 = arith.constant 0 : index
    %c0_12 = arith.constant 0 : index
    %14 = vector.load %arg4[%c0_11, %c0_12] : memref<512x256xbf16, #tpu.memory_space<vmem>>, vector<512x256xbf16>
    %cst_13 = arith.constant dense<0.000000e+00> : vector<8x256xf32>
    %15 = tpu.matmul %13, %14, %cst_13 {dimension_numbers = #tpu.dot_dimension_numbers<[1], [0], [0], [1], [0, 0, 1, 1], [], []>} : vector<8x512xbf16>, vector<512x256xbf16>, vector<8x256xf32> -> vector<8x256xf32>
    %c0_14 = arith.constant 0 : index
    %c0_15 = arith.constant 0 : index
    %16 = vector.load %arg5[%c0_14, %c0_15] : memref<1x256xf32, #tpu.memory_space<vmem>>, vector<1x256xf32>
    %17 = vector.broadcast %16 : vector<1x256xf32> to vector<8x256xf32>
    %18 = arith.addf %15, %17 : vector<8x256xf32>
    %cst_16 = arith.constant 0.000000e+00 : f32
    %19 = vector.broadcast %cst_16 : f32 to vector<8x256xf32>
    %20 = arith.cmpf ogt, %18, %19 : vector<8x256xf32>
    %cst_17 = arith.constant 2.000000e-01 : f32
    %21 = vector.broadcast %cst_17 : f32 to vector<8x256xf32>
    %22 = arith.mulf %21, %18 : vector<8x256xf32>
    %23 = arith.select %20, %18, %22 : vector<8x256xi1>, vector<8x256xf32>
    %24 = arith.truncf %23 : vector<8x256xf32> to vector<8x256xbf16>
    %c0_18 = arith.constant 0 : index
    %c0_19 = arith.constant 0 : index
    %25 = vector.load %arg10[%c0_18, %c0_19] : memref<8x256xbf16, #tpu.memory_space<vmem>>, vector<8x256xbf16>
    tpu.vector_store %arg10[%c0_18, %c0_19], %24 {strides = array<i32>} : memref<8x256xbf16, #tpu.memory_space<vmem>>, vector<8x256xbf16>,
    %c0_20 = arith.constant 0 : index
    %c0_21 = arith.constant 0 : index
    %26 = vector.load %arg10[%c0_20, %c0_21] : memref<8x256xbf16, #tpu.memory_space<vmem>>, vector<8x256xbf16>
    %c0_22 = arith.constant 0 : index
    %c0_23 = arith.constant 0 : index
    %27 = vector.load %arg6[%c0_22, %c0_23] : memref<256x128xbf16, #tpu.memory_space<vmem>>, vector<256x128xbf16>
    %cst_24 = arith.constant dense<0.000000e+00> : vector<8x128xf32>
    %28 = tpu.matmul %26, %27, %cst_24 {dimension_numbers = #tpu.dot_dimension_numbers<[1], [0], [0], [1], [0, 0, 1, 1], [], []>} : vector<8x256xbf16>, vector<256x128xbf16>, vector<8x128xf32> -> vector<8x128xf32>
    %c0_25 = arith.constant 0 : index
    %c0_26 = arith.constant 0 : index
    %29 = vector.load %arg7[%c0_25, %c0_26] : memref<1x128xf32, #tpu.memory_space<vmem>>, vector<1x128xf32>
    %30 = vector.broadcast %29 : vector<1x128xf32> to vector<8x128xf32>
    %31 = arith.addf %28, %30 : vector<8x128xf32>
    %c0_27 = arith.constant 0 : index
    %c0_28 = arith.constant 0 : index
    %32 = vector.load %arg8[%c0_27, %c0_28] : memref<8x128xf32, #tpu.memory_space<vmem>>, vector<8x128xf32>
    tpu.vector_store %arg8[%c0_27, %c0_28], %31 {strides = array<i32>} : memref<8x128xf32, #tpu.memory_space<vmem>>, vector<8x128xf32>,
    return
  }
  func.func @transform_0(%arg0: i32) -> (i32, i32) {
    %c0_i32 = arith.constant 0 : i32
    %c0_i32_0 = arith.constant 0 : i32
    return %arg0, %c0_i32 : i32, i32
  }
  func.func @transform_1(%arg0: i32) -> (i32, i32) {
    %c0_i32 = arith.constant 0 : i32
    %c0_i32_0 = arith.constant 0 : i32
    %c0_i32_1 = arith.constant 0 : i32
    return %c0_i32, %c0_i32_0 : i32, i32
  }
  func.func @transform_2(%arg0: i32) -> (i32, i32) {
    %c0_i32 = arith.constant 0 : i32
    %c0_i32_0 = arith.constant 0 : i32
    %c0_i32_1 = arith.constant 0 : i32
    return %c0_i32, %c0_i32_0 : i32, i32
  }
  func.func @transform_3(%arg0: i32) -> (i32, i32) {
    %c0_i32 = arith.constant 0 : i32
    %c0_i32_0 = arith.constant 0 : i32
    %c0_i32_1 = arith.constant 0 : i32
    return %c0_i32, %c0_i32_0 : i32, i32
  }
  func.func @transform_4(%arg0: i32) -> (i32, i32) {
    %c0_i32 = arith.constant 0 : i32
    %c0_i32_0 = arith.constant 0 : i32
    %c0_i32_1 = arith.constant 0 : i32
    return %c0_i32, %c0_i32_0 : i32, i32
  }
  func.func @transform_5(%arg0: i32) -> (i32, i32) {
    %c0_i32 = arith.constant 0 : i32
    %c0_i32_0 = arith.constant 0 : i32
    %c0_i32_1 = arith.constant 0 : i32
    return %c0_i32, %c0_i32_0 : i32, i32
  }
  func.func @transform_6(%arg0: i32) -> (i32, i32) {
    %c0_i32 = arith.constant 0 : i32
    %c0_i32_0 = arith.constant 0 : i32
    %c0_i32_1 = arith.constant 0 : i32
    return %c0_i32, %c0_i32_0 : i32, i32
  }
  func.func @transform_7(%arg0: i32) -> (i32, i32) {
    %c0_i32 = arith.constant 0 : i32
    %c0_i32_0 = arith.constant 0 : i32
    return %arg0, %c0_i32 : i32, i32
  }
}

</mosaic_0001>

<bundles_post_ra>
// kernel: abstract_encoder_forward.1
= control target key start
LH: loop header
LB: loop body
LE: loop exit
PB: predicated region body
PF: predicated region fallthrough
CT: control target
= control target key end

     0   :  { %12 = vsyncpa [#allocation5], 0  ;;  %s3841_s0 = inlined_call_operand.vmem [shape: bf16[8,1024], index: 0, kind: input, shape index: {}]   ;;  %s3842_s1 = inlined_call_operand.hbm [shape: bf16[1024,512], index: 1, kind: input, shape index: {}]   ;;  %s3843_s2 = inlined_call_operand.vmem [shape: f32[1,512], index: 2, kind: input, shape index: {}]   ;;  %s3844_s3 = inlined_call_operand.hbm [shape: bf16[512,256], index: 3, kind: input, shape index: {}]   ;;  %s3845_s4 = inlined_call_operand.vmem [shape: f32[1,256], index: 4, kind: input, shape index: {}]   ;;  %s3846_s5 = inlined_call_operand.vmem [shape: bf16[256,128], index: 5, kind: input, shape index: {}]   ;;  %s3847_s6 = inlined_call_operand.vmem [shape: f32[1,128], index: 6, kind: input, shape index: {}]   ;;  %s3848_s7 = inlined_call_operand.vmem [shape: f32[8,128], index: 7, kind: output, shape index: {}]  }
   0x1   :  { %13 = vsyncpa [#allocation7], 0  ;;  %s3641_s24 = smov [#allocation4]  }
   0x2   :  { %s21_s25 = sshll.u32 %s3641_s24, 4  ;;  %s22_s25 = int_to_ptr.vmem [resolvable:$true] %s21_s25 }
   0x3   :  { %s3605_s26 = scalar_lea.vmem %s22_s25, 32768  ;;  %p3610_p1 = scmp.lt.s32.totalorder %s22_s25, %s22_s25 }
   0x4   :  { %p3606_p0 = scmp.ne.s32.totalorder %s22_s25, %s3605_s26  ;;  %p3611_p2 = scmp.lt.s32.totalorder %s3605_s26, %s3605_s26 }
   0x6   :  { %p3612_p3 = por %p3611_p2, %p3610_p1 }
   0x8   :  { %p3613_p4 = pnand %p3612_p3, %p3606_p0 }
   0xa   :  { %3616 = shalt.err (!%p3613_p4)
}
   0xb   :  { %s3642_s27 = smov 256   ;;  %s3643_s28 = smov 16  }
   0xc   :  { %27 = dma.hbm_to_vmem [thread:$0]  %s3842_s1, 32768, %s22_s25, [#allocation5], %s3642_s27, %s3642_s27, %s3643_s28  }
   0xd   :  { %s3644_s8 = smov [#allocation6]  }
   0xe   :  { %s35_s9 = sshll.u32 %s3644_s8, 4  ;;  %s36_s9 = int_to_ptr.vmem [resolvable:$true] %s35_s9 }
   0xf   :  { %s3625_s10 = scalar_lea.vmem %s36_s9, 8192  ;;  %p3630_p6 = scmp.lt.s32.totalorder %s36_s9, %s36_s9 }
  0x10   :  { %p3626_p5 = scmp.ne.s32.totalorder %s36_s9, %s3625_s10  ;;  %p3631_p7 = scmp.lt.s32.totalorder %s3625_s10, %s3625_s10 }
  0x12   :  { %p3632_p8 = por %p3631_p7, %p3630_p6 }
  0x14   :  { %p3633_p9 = pnand %p3632_p8, %p3626_p5 }
  0x16   :  { %3636 = shalt.err (!%p3633_p9)
}
  0x17   :  { %s3645_s11 = smov 128   ;;  %s3646_s12 = smov 8  }
  0x18   :  { %41 = dma.hbm_to_vmem [thread:$0]  %s3844_s3, 8192, %s36_s9, [#allocation7], %s3645_s11, %s3645_s11, %s3646_s12  }
  0x19   :  { %3637 = dma.done.wait [#allocation5], 32768  }
  0x1a   :  { %3638 = vsyncadd [#allocation5], 4294934528 }
  0x1b   :  { %3639 = dma.done.wait [#allocation7], 8192  }
  0x1c   :  { %3640 = vsyncadd [#allocation7], 4294959104  ;;  %v3093_v0 = vld [vmem:[#allocation4 + $0xe4] ss:$16 sps:$4 sm:$0xff]   ;;  %v3097_v2 = vld [vmem:[#allocation4 + $0xe0] ss:$16 sps:$4 sm:$0xff]  }
  0x1d   :  { %v3095_v1 = vld [vmem:[#allocation4 + $0x2e4] ss:$16 sps:$4 sm:$0xff]   ;;  %1645 = vmatprep.subr.bf16.mxu0 %v3093_v0  ;;  %v3098_v3 = vld [vmem:[#allocation4 + $0x2e0] ss:$16 sps:$4 sm:$0xff]   ;;  %v56_v48 = vld [vmem:[%s3841_s0 + $0x8] sm:$0xff] }
  0x1e   :  { %1686 = vmatprep.subr.bf16.mxu1 %v3095_v1  ;;  %v3099_v4 = vld [vmem:[#allocation4 + $0xc4] ss:$16 sps:$4 sm:$0xff]   ;;  %1646 = vmatpush1.bf16.msra.mxu0 %v3097_v2  ;;  %v3103_v6 = vld [vmem:[#allocation4 + $0xc0] ss:$16 sps:$4 sm:$0xff]   ;;  %v3701_v51 = vcombine.high %v56_v48, %v56_v48 }
  0x1f   :  { %1687 = vmatpush1.bf16.msra.mxu1 %v3098_v3  ;;  %v3101_v5 = vld [vmem:[#allocation4 + $0x2c4] ss:$16 sps:$4 sm:$0xff]   ;;  %1647 = vmatprep.subr.bf16.mxu0 %v3099_v4  ;;  %v3104_v7 = vld [vmem:[#allocation4 + $0x2c0] ss:$16 sps:$4 sm:$0xff]  }
  0x20   :  { %1688 = vmatprep.subr.bf16.mxu1 %v3101_v5  ;;  %v3105_v8 = vld [vmem:[#allocation4 + $0xa4] ss:$16 sps:$4 sm:$0xff]   ;;  %v3109_v10 = vld [vmem:[#allocation4 + $0xa0] ss:$16 sps:$4 sm:$0xff]   ;;  %1718 = vmatprep.mubr.bf16.mxu1 %v3701_v51 }
  0x21   :  { %v3107_v9 = vld [vmem:[#allocation4 + $0x2a4] ss:$16 sps:$4 sm:$0xff]   ;;  %v3110_v11 = vld [vmem:[#allocation4 + $0x2a0] ss:$16 sps:$4 sm:$0xff]  }
  0x22   :  { %1648 = vmatpush1.bf16.msra.mxu0 %v3103_v6  ;;  %v3111_v12 = vld [vmem:[#allocation4 + $0x84] ss:$16 sps:$4 sm:$0xff]   ;;  %v3115_v14 = vld [vmem:[#allocation4 + $0x80] ss:$16 sps:$4 sm:$0xff]  }
  0x23   :  { %1689 = vmatpush1.bf16.msra.mxu1 %v3104_v7  ;;  %1649 = vmatprep.subr.bf16.mxu0 %v3105_v8  ;;  %v3113_v13 = vld [vmem:[#allocation4 + $0x284] ss:$16 sps:$4 sm:$0xff]   ;;  %v3116_v15 = vld [vmem:[#allocation4 + $0x280] ss:$16 sps:$4 sm:$0xff]   ;;  %v3707_v7 = vcombine.low %v56_v48, %v56_v48 }
  0x24   :  { %1690 = vmatprep.subr.bf16.mxu1 %v3107_v9  ;;  %v3117_v16 = vld [vmem:[#allocation4 + $0x64] ss:$16 sps:$4 sm:$0xff]   ;;  %v3121_v18 = vld [vmem:[#allocation4 + $0x60] ss:$16 sps:$4 sm:$0xff]  }
  0x25   :  { %v3119_v17 = vld [vmem:[#allocation4 + $0x264] ss:$16 sps:$4 sm:$0xff]   ;;  %v3122_v19 = vld [vmem:[#allocation4 + $0x260] ss:$16 sps:$4 sm:$0xff]  }
  0x26   :  { %1650 = vmatpush1.bf16.msra.mxu0 %v3109_v10  ;;  %v3123_v20 = vld [vmem:[#allocation4 + $0x44] ss:$16 sps:$4 sm:$0xff]   ;;  %v3127_v22 = vld [vmem:[#allocation4 + $0x40] ss:$16 sps:$4 sm:$0xff]  }
  0x27   :  { %1691 = vmatpush1.bf16.msra.mxu1 %v3110_v11  ;;  %1651 = vmatprep.subr.bf16.mxu0 %v3111_v12  ;;  %v3125_v21 = vld [vmem:[#allocation4 + $0x244] ss:$16 sps:$4 sm:$0xff]   ;;  %v3128_v23 = vld [vmem:[#allocation4 + $0x240] ss:$16 sps:$4 sm:$0xff]  }
  0x28   :  { %1692 = vmatprep.subr.bf16.mxu1 %v3113_v13  ;;  %v3129_v24 = vld [vmem:[#allocation4 + $0x24] ss:$16 sps:$4 sm:$0xff]   ;;  %v3133_v26 = vld [vmem:[#allocation4 + $0x20] ss:$16 sps:$4 sm:$0xff]  }
  0x29   :  { %v3131_v25 = vld [vmem:[#allocation4 + $0x224] ss:$16 sps:$4 sm:$0xff]   ;;  %v3134_v27 = vld [vmem:[#allocation4 + $0x220] ss:$16 sps:$4 sm:$0xff]  }
  0x2a   :  { %1652 = vmatpush1.bf16.msra.mxu0 %v3115_v14  ;;  %v3135_v28 = vld [vmem:[#allocation4 + $0x4] ss:$16 sps:$4 sm:$0xff]   ;;  %v3139_v30 = vld [vmem:[#allocation4] ss:$16 sps:$4 sm:$0xff]  }
  0x2b   :  { %1693 = vmatpush1.bf16.msra.mxu1 %v3116_v15  ;;  %1653 = vmatprep.subr.bf16.mxu0 %v3117_v16  ;;  %v3137_v29 = vld [vmem:[#allocation4 + $0x204] ss:$16 sps:$4 sm:$0xff]   ;;  %v3140_v31 = vld [vmem:[#allocation4 + $0x200] ss:$16 sps:$4 sm:$0xff]  }
  0x2c   :  { %1694 = vmatprep.subr.bf16.mxu1 %v3119_v17  ;;  %v3141_v32 = vld [vmem:[#allocation4 + $0x1e4] ss:$16 sps:$4 sm:$0xff]   ;;  %v3145_v34 = vld [vmem:[#allocation4 + $0x1e0] ss:$16 sps:$4 sm:$0xff]  }
  0x2d   :  { %v3143_v33 = vld [vmem:[#allocation4 + $0x3e4] ss:$16 sps:$4 sm:$0xff]   ;;  %v3146_v35 = vld [vmem:[#allocation4 + $0x3e0] ss:$16 sps:$4 sm:$0xff]  }
  0x2e   :  { %1654 = vmatpush1.bf16.msra.mxu0 %v3121_v18  ;;  %v3147_v36 = vld [vmem:[#allocation4 + $0x1c4] ss:$16 sps:$4 sm:$0xff]   ;;  %v3151_v38 = vld [vmem:[#allocation4 + $0x1c0] ss:$16 sps:$4 sm:$0xff]  }
  0x2f   :  { %1695 = vmatpush1.bf16.msra.mxu1 %v3122_v19  ;;  %1655 = vmatprep.subr.bf16.mxu0 %v3123_v20  ;;  %v3149_v37 = vld [vmem:[#allocation4 + $0x3c4] ss:$16 sps:$4 sm:$0xff]   ;;  %v3152_v39 = vld [vmem:[#allocation4 + $0x3c0] ss:$16 sps:$4 sm:$0xff]  }
  0x30   :  { %1696 = vmatprep.subr.bf16.mxu1 %v3125_v21  ;;  %v3153_v40 = vld [vmem:[#allocation4 + $0x1a4] ss:$16 sps:$4 sm:$0xff]   ;;  %v3157_v42 = vld [vmem:[#allocation4 + $0x1a0] ss:$16 sps:$4 sm:$0xff]  }
  0x31   :  { %v3155_v41 = vld [vmem:[#allocation4 + $0x3a4] ss:$16 sps:$4 sm:$0xff]   ;;  %v3158_v43 = vld [vmem:[#allocation4 + $0x3a0] ss:$16 sps:$4 sm:$0xff]  }
  0x32   :  { %1656 = vmatpush1.bf16.msra.mxu0 %v3127_v22  ;;  %v3159_v44 = vld [vmem:[#allocation4 + $0x184] ss:$16 sps:$4 sm:$0xff]   ;;  %v3163_v49 = vld [vmem:[#allocation4 + $0x180] ss:$16 sps:$4 sm:$0xff]  }
  0x33   :  { %1697 = vmatpush1.bf16.msra.mxu1 %v3128_v23  ;;  %1657 = vmatprep.subr.bf16.mxu0 %v3129_v24  ;;  %v3161_v45 = vld [vmem:[#allocation4 + $0x384] ss:$16 sps:$4 sm:$0xff]   ;;  %v3164_v50 = vld [vmem:[#allocation4 + $0x380] ss:$16 sps:$4 sm:$0xff]  }
  0x34   :  { %1698 = vmatprep.subr.bf16.mxu1 %v3131_v25  ;;  %v55_v46 = vld [vmem:[%s3841_s0] sm:$0xff] }
  0x35   :  { %v3696_v47 = vcombine.high %v55_v46, %v55_v46  ;;  %v3165_v52 = vld [vmem:[#allocation4 + $0x164] ss:$16 sps:$4 sm:$0xff]   ;;  %v3169_v54 = vld [vmem:[#allocation4 + $0x160] ss:$16 sps:$4 sm:$0xff]   ;;  %v3705_v6 = vcombine.low %v55_v46, %v55_v46 }
  0x36   :  { %1658 = vmatpush1.bf16.msra.mxu0 %v3133_v26  ;;  %v3167_v53 = vld [vmem:[#allocation4 + $0x364] ss:$16 sps:$4 sm:$0xff]   ;;  %v3170_v55 = vld [vmem:[#allocation4 + $0x360] ss:$16 sps:$4 sm:$0xff]  }
  0x37   :  { %1699 = vmatpush1.bf16.msra.mxu1 %v3134_v27  ;;  %1659 = vmatprep.subr.bf16.mxu0 %v3135_v28  ;;  %v3171_v56 = vld [vmem:[#allocation4 + $0x144] ss:$16 sps:$4 sm:$0xff]   ;;  %v3175_v58 = vld [vmem:[#allocation4 + $0x140] ss:$16 sps:$4 sm:$0xff]  }
  0x38   :  { %1700 = vmatprep.subr.bf16.mxu1 %v3137_v29  ;;  %1677 = vmatprep.mubr.bf16.mxu0 %v3696_v47  ;;  %v3173_v57 = vld [vmem:[#allocation4 + $0x344] ss:$16 sps:$4 sm:$0xff]   ;;  %v3176_v59 = vld [vmem:[#allocation4 + $0x340] ss:$16 sps:$4 sm:$0xff]  }
  0x39   :  { %v3177_v60 = vld [vmem:[#allocation4 + $0x124] ss:$16 sps:$4 sm:$0xff]   ;;  %v3181_v62 = vld [vmem:[#allocation4 + $0x120] ss:$16 sps:$4 sm:$0xff]  }
  0x3a   :  { %1660 = vmatpush1.bf16.msra.mxu0 %v3139_v30  ;;  %v3179_v61 = vld [vmem:[#allocation4 + $0x324] ss:$16 sps:$4 sm:$0xff]   ;;  %v3182_v63 = vld [vmem:[#allocation4 + $0x320] ss:$16 sps:$4 sm:$0xff]  }
  0x3b   :  { %1701 = vmatpush1.bf16.msra.mxu1 %v3140_v31  ;;  %1661 = vmatprep.subr.bf16.mxu0 %v3141_v32  ;;  %v3183_v0 = vld [vmem:[#allocation4 + $0x104] ss:$16 sps:$4 sm:$0xff]   ;;  %v3187_v2 = vld [vmem:[#allocation4 + $0x100] ss:$16 sps:$4 sm:$0xff]  }
  0x3c   :  { %1702 = vmatprep.subr.bf16.mxu1 %v3143_v33  ;;  %v3185_v1 = vld [vmem:[#allocation4 + $0x304] ss:$16 sps:$4 sm:$0xff]   ;;  %v3188_v3 = vld [vmem:[#allocation4 + $0x300] ss:$16 sps:$4 sm:$0xff]   ;;  %v3719_v33 = vld [vmem:[%s3841_s0 + $0x18] sm:$0xff] }
  0x3d   :  { %v3195_v4 = vld [vmem:[#allocation4 + $0x4e4] ss:$16 sps:$4 sm:$0xff]   ;;  %v3193_v8 = vld [vmem:[#allocation4 + $0x4e0] ss:$16 sps:$4 sm:$0xff]  }
  0x3e   :  { %1662 = vmatpush2.bf16.msra.mxu0 %v3145_v34  ;;  %v3198_v5 = vld [vmem:[#allocation4 + $0x6e4] ss:$16 sps:$4 sm:$0xff]   ;;  %v3196_v9 = vld [vmem:[#allocation4 + $0x6e0] ss:$16 sps:$4 sm:$0xff]  }
  0x3f   :  { %1703 = vmatpush2.bf16.msra.mxu1 %v3146_v35  ;;  %1663 = vmatprep.subr.bf16.mxu0 %v3147_v36  ;;  %v3201_v10 = vld [vmem:[#allocation4 + $0x4c4] ss:$16 sps:$4 sm:$0xff]   ;;  %v3199_v12 = vld [vmem:[#allocation4 + $0x4c0] ss:$16 sps:$4 sm:$0xff]  }
  0x40   :  { %1704 = vmatprep.subr.bf16.mxu1 %v3149_v37  ;;  %v3204_v11 = vld [vmem:[#allocation4 + $0x6c4] ss:$16 sps:$4 sm:$0xff]   ;;  %v3202_v13 = vld [vmem:[#allocation4 + $0x6c0] ss:$16 sps:$4 sm:$0xff]   ;;  %v3727_v37 = vcombine.high %v3719_v33, %v3719_v33 }
  0x41   :  { %v3207_v14 = vld [vmem:[#allocation4 + $0x4a4] ss:$16 sps:$4 sm:$0xff]   ;;  %v3205_v16 = vld [vmem:[#allocation4 + $0x4a0] ss:$16 sps:$4 sm:$0xff]  }
  0x42   :  { %1664 = vmatpush2.bf16.msra.mxu0 %v3151_v38  ;;  %v3210_v15 = vld [vmem:[#allocation4 + $0x6a4] ss:$16 sps:$4 sm:$0xff]   ;;  %v3208_v17 = vld [vmem:[#allocation4 + $0x6a0] ss:$16 sps:$4 sm:$0xff]  }
  0x43   :  { %1705 = vmatpush2.bf16.msra.mxu1 %v3152_v39  ;;  %1665 = vmatprep.subr.bf16.mxu0 %v3153_v40  ;;  %v3213_v18 = vld [vmem:[#allocation4 + $0x484] ss:$16 sps:$4 sm:$0xff]   ;;  %v3211_v20 = vld [vmem:[#allocation4 + $0x480] ss:$16 sps:$4 sm:$0xff]  }
  0x44   :  { %1706 = vmatprep.subr.bf16.mxu1 %v3155_v41  ;;  %v3216_v19 = vld [vmem:[#allocation4 + $0x684] ss:$16 sps:$4 sm:$0xff]   ;;  %v3214_v21 = vld [vmem:[#allocation4 + $0x680] ss:$16 sps:$4 sm:$0xff]  }
  0x45   :  { %v3219_v22 = vld [vmem:[#allocation4 + $0x464] ss:$16 sps:$4 sm:$0xff]   ;;  %v3217_v24 = vld [vmem:[#allocation4 + $0x460] ss:$16 sps:$4 sm:$0xff]  }
  0x46   :  { %1666 = vmatpush2.bf16.msra.mxu0 %v3157_v42  ;;  %v3222_v23 = vld [vmem:[#allocation4 + $0x664] ss:$16 sps:$4 sm:$0xff]   ;;  %v3220_v25 = vld [vmem:[#allocation4 + $0x660] ss:$16 sps:$4 sm:$0xff]  }
  0x47   :  { %1707 = vmatpush2.bf16.msra.mxu1 %v3158_v43  ;;  %1667 = vmatprep.subr.bf16.mxu0 %v3159_v44  ;;  %v3225_v26 = vld [vmem:[#allocation4 + $0x444] ss:$16 sps:$4 sm:$0xff]   ;;  %v3223_v28 = vld [vmem:[#allocation4 + $0x440] ss:$16 sps:$4 sm:$0xff]  }
  0x48   :  { %1708 = vmatprep.subr.bf16.mxu1 %v3161_v45  ;;  %v3228_v27 = vld [vmem:[#allocation4 + $0x644] ss:$16 sps:$4 sm:$0xff]   ;;  %v3226_v29 = vld [vmem:[#allocation4 + $0x640] ss:$16 sps:$4 sm:$0xff]  }
  0x49   :  { %v3231_v30 = vld [vmem:[#allocation4 + $0x424] ss:$16 sps:$4 sm:$0xff]   ;;  %v3229_v34 = vld [vmem:[#allocation4 + $0x420] ss:$16 sps:$4 sm:$0xff]  }
  0x4a   :  { %1668 = vmatpush2.bf16.msra.mxu0 %v3163_v49  ;;  %v3234_v31 = vld [vmem:[#allocation4 + $0x624] ss:$16 sps:$4 sm:$0xff]   ;;  %v3232_v35 = vld [vmem:[#allocation4 + $0x620] ss:$16 sps:$4 sm:$0xff]  }
  0x4b   :  { %1709 = vmatpush2.bf16.msra.mxu1 %v3164_v50  ;;  %1669 = vmatprep.subr.bf16.mxu0 %v3165_v52  ;;  %v3714_v32 = vld [vmem:[%s3841_s0 + $0x10] sm:$0xff] }
  0x4c   :  { %1710 = vmatprep.subr.bf16.mxu1 %v3167_v53  ;;  %v3723_v36 = vcombine.high %v3714_v32, %v3714_v32  ;;  %v3237_v38 = vld [vmem:[#allocation4 + $0x404] ss:$16 sps:$4 sm:$0xff]   ;;  %v3235_v40 = vld [vmem:[#allocation4 + $0x400] ss:$16 sps:$4 sm:$0xff]  }
  0x4d   :  { %v3240_v39 = vld [vmem:[#allocation4 + $0x604] ss:$16 sps:$4 sm:$0xff]   ;;  %v3238_v41 = vld [vmem:[#allocation4 + $0x600] ss:$16 sps:$4 sm:$0xff]  }
  0x4e   :  { %1670 = vmatpush2.bf16.msra.mxu0 %v3169_v54  ;;  %v3243_v42 = vld [vmem:[#allocation4 + $0x5e4] ss:$16 sps:$4 sm:$0xff]   ;;  %v3241_v44 = vld [vmem:[#allocation4 + $0x5e0] ss:$16 sps:$4 sm:$0xff]  }
  0x4f   :  { %1711 = vmatpush2.bf16.msra.mxu1 %v3170_v55  ;;  %1671 = vmatprep.subr.bf16.mxu0 %v3171_v56  ;;  %v3246_v43 = vld [vmem:[#allocation4 + $0x7e4] ss:$16 sps:$4 sm:$0xff]   ;;  %v3244_v45 = vld [vmem:[#allocation4 + $0x7e0] ss:$16 sps:$4 sm:$0xff]  }
  0x50   :  { %1712 = vmatprep.subr.bf16.mxu1 %v3173_v57  ;;  %v3249_v46 = vld [vmem:[#allocation4 + $0x5c4] ss:$16 sps:$4 sm:$0xff]   ;;  %v3247_v49 = vld [vmem:[#allocation4 + $0x5c0] ss:$16 sps:$4 sm:$0xff]  }
  0x51   :  { %v3252_v48 = vld [vmem:[#allocation4 + $0x7c4] ss:$16 sps:$4 sm:$0xff]   ;;  %v3250_v50 = vld [vmem:[#allocation4 + $0x7c0] ss:$16 sps:$4 sm:$0xff]  }
  0x52   :  { %1672 = vmatpush2.bf16.msra.mxu0 %v3175_v58  ;;  %v3255_v52 = vld [vmem:[#allocation4 + $0x5a4] ss:$16 sps:$4 sm:$0xff]   ;;  %v3253_v54 = vld [vmem:[#allocation4 + $0x5a0] ss:$16 sps:$4 sm:$0xff]  }
  0x53   :  { %1713 = vmatpush2.bf16.msra.mxu1 %v3176_v59  ;;  %1673 = vmatprep.subr.bf16.mxu0 %v3177_v60  ;;  %v3258_v53 = vld [vmem:[#allocation4 + $0x7a4] ss:$16 sps:$4 sm:$0xff]   ;;  %v3256_v55 = vld [vmem:[#allocation4 + $0x7a0] ss:$16 sps:$4 sm:$0xff]  }
  0x54   :  { %1714 = vmatprep.subr.bf16.mxu1 %v3179_v61  ;;  %v3261_v56 = vld [vmem:[#allocation4 + $0x584] ss:$16 sps:$4 sm:$0xff]   ;;  %v3259_v58 = vld [vmem:[#allocation4 + $0x580] ss:$16 sps:$4 sm:$0xff]  }
  0x55   :  { %v3264_v57 = vld [vmem:[#allocation4 + $0x784] ss:$16 sps:$4 sm:$0xff]   ;;  %v3262_v59 = vld [vmem:[#allocation4 + $0x780] ss:$16 sps:$4 sm:$0xff]  }
  0x56   :  { %1674 = vmatpush2.bf16.msra.mxu0 %v3181_v62  ;;  %v3267_v60 = vld [vmem:[#allocation4 + $0x564] ss:$16 sps:$4 sm:$0xff]   ;;  %v3265_v62 = vld [vmem:[#allocation4 + $0x560] ss:$16 sps:$4 sm:$0xff]  }
  0x57   :  { %1715 = vmatpush2.bf16.msra.mxu1 %v3182_v63  ;;  %1675 = vmatprep.subr.bf16.mxu0 %v3183_v0  ;;  %v3270_v61 = vld [vmem:[#allocation4 + $0x764] ss:$16 sps:$4 sm:$0xff]   ;;  %v3268_v63 = vld [vmem:[#allocation4 + $0x760] ss:$16 sps:$4 sm:$0xff]  }
  0x58   :  { %1716 = vmatprep.subr.bf16.mxu1 %v3185_v1  ;;  %v3273_v0 = vld [vmem:[#allocation4 + $0x544] ss:$16 sps:$4 sm:$0xff]  }
  0x59   :  { %v3276_v1 = vld [vmem:[#allocation4 + $0x744] ss:$16 sps:$4 sm:$0xff]  }
  0x5a   :  { %1676 = vmatpush2.bf16.msra.mxu0 %v3187_v2  ;;  %v3271_v2 = vld [vmem:[#allocation4 + $0x540] ss:$16 sps:$4 sm:$0xff]  }
  0x5b   :  { %1717 = vmatpush2.bf16.msra.mxu1 %v3188_v3  ;;  %1727 = vmatprep.subr.bf16.mxu0 %v3195_v4  ;;  %v3274_v3 = vld [vmem:[#allocation4 + $0x740] ss:$16 sps:$4 sm:$0xff]   ;;  %v3279_v4 = vld [vmem:[#allocation4 + $0x524] ss:$16 sps:$4 sm:$0xff]  }
  0x5c   :  { %1768 = vmatprep.subr.bf16.mxu1 %v3198_v5  ;;  %v3282_v5 = vld [vmem:[#allocation4 + $0x724] ss:$16 sps:$4 sm:$0xff]  }
  0x5d   :  { %1678 = vmatmul.mubr.bf16.vlgmr.msra.gmra.mxu0 %v3705_v6 }
  0x5e   :  { %1719 = vmatmul.mubr.bf16.vlgmr.msra.gmra.mxu1 %v3707_v7  ;;  %1728 = vmatpush1.bf16.msra.mxu0 %v3193_v8  ;;  %v3277_v8 = vld [vmem:[#allocation4 + $0x520] ss:$16 sps:$4 sm:$0xff]  }
  0x5f   :  { %1769 = vmatpush1.bf16.msra.mxu1 %v3196_v9  ;;  %1729 = vmatprep.subr.bf16.mxu0 %v3201_v10  ;;  %v3280_v9 = vld [vmem:[#allocation4 + $0x720] ss:$16 sps:$4 sm:$0xff]   ;;  %v3285_v10 = vld [vmem:[#allocation4 + $0x504] ss:$16 sps:$4 sm:$0xff]  }
  0x60   :  { %1770 = vmatprep.subr.bf16.mxu1 %v3204_v11  ;;  %1759 = vmatprep.mubr.bf16.mxu0 %v3723_v36  ;;  %v3288_v11 = vld [vmem:[#allocation4 + $0x704] ss:$16 sps:$4 sm:$0xff]  }
  0x61   :  { %1800 = vmatprep.mubr.bf16.mxu1 %v3727_v37 }
  0x62   :  { %1730 = vmatpush1.bf16.msra.mxu0 %v3199_v12  ;;  %v3283_v12 = vld [vmem:[#allocation4 + $0x500] ss:$16 sps:$4 sm:$0xff]  }
  0x63   :  { %1771 = vmatpush1.bf16.msra.mxu1 %v3202_v13  ;;  %1731 = vmatprep.subr.bf16.mxu0 %v3207_v14  ;;  %v3286_v13 = vld [vmem:[#allocation4 + $0x700] ss:$16 sps:$4 sm:$0xff]   ;;  %v3295_v14 = vld [vmem:[#allocation4 + $0xec] ss:$16 sps:$4 sm:$0xff]  }
  0x64   :  { %1772 = vmatprep.subr.bf16.mxu1 %v3210_v15  ;;  %v3298_v15 = vld [vmem:[#allocation4 + $0x2ec] ss:$16 sps:$4 sm:$0xff]  }
  0x66   :  { %1732 = vmatpush1.bf16.msra.mxu0 %v3205_v16  ;;  %v3733_v16 = vcombine.low %v3714_v32, %v3714_v32  ;;  %v3319_v32 = vld [vmem:[#allocation4 + $0x6c] ss:$16 sps:$4 sm:$0xff]  }
  0x67   :  { %1773 = vmatpush1.bf16.msra.mxu1 %v3208_v17  ;;  %1733 = vmatprep.subr.bf16.mxu0 %v3213_v18  ;;  %v3737_v17 = vcombine.low %v3719_v33, %v3719_v33  ;;  %v3293_v18 = vld [vmem:[#allocation4 + $0xe8] ss:$16 sps:$4 sm:$0xff]   ;;  %v3322_v33 = vld [vmem:[#allocation4 + $0x26c] ss:$16 sps:$4 sm:$0xff]  }
  0x68   :  { %1774 = vmatprep.subr.bf16.mxu1 %v3216_v19  ;;  %v3296_v19 = vld [vmem:[#allocation4 + $0x2e8] ss:$16 sps:$4 sm:$0xff]  }
  0x6a   :  { %1734 = vmatpush1.bf16.msra.mxu0 %v3211_v20  ;;  %v3301_v20 = vld [vmem:[#allocation4 + $0xcc] ss:$16 sps:$4 sm:$0xff]  }
  0x6b   :  { %1775 = vmatpush1.bf16.msra.mxu1 %v3214_v21  ;;  %1735 = vmatprep.subr.bf16.mxu0 %v3219_v22  ;;  %v3304_v21 = vld [vmem:[#allocation4 + $0x2cc] ss:$16 sps:$4 sm:$0xff]   ;;  %v3299_v22 = vld [vmem:[#allocation4 + $0xc8] ss:$16 sps:$4 sm:$0xff]  }
  0x6c   :  { %1776 = vmatprep.subr.bf16.mxu1 %v3222_v23  ;;  %v3302_v23 = vld [vmem:[#allocation4 + $0x2c8] ss:$16 sps:$4 sm:$0xff]  }
  0x6e   :  { %1736 = vmatpush1.bf16.msra.mxu0 %v3217_v24  ;;  %v3307_v24 = vld [vmem:[#allocation4 + $0xac] ss:$16 sps:$4 sm:$0xff]  }
  0x6f   :  { %1777 = vmatpush1.bf16.msra.mxu1 %v3220_v25  ;;  %1737 = vmatprep.subr.bf16.mxu0 %v3225_v26  ;;  %v3310_v25 = vld [vmem:[#allocation4 + $0x2ac] ss:$16 sps:$4 sm:$0xff]   ;;  %v3305_v26 = vld [vmem:[#allocation4 + $0xa8] ss:$16 sps:$4 sm:$0xff]  }
  0x70   :  { %1778 = vmatprep.subr.bf16.mxu1 %v3228_v27  ;;  %v3308_v27 = vld [vmem:[#allocation4 + $0x2a8] ss:$16 sps:$4 sm:$0xff]  }
  0x72   :  { %1738 = vmatpush1.bf16.msra.mxu0 %v3223_v28  ;;  %v3313_v28 = vld [vmem:[#allocation4 + $0x8c] ss:$16 sps:$4 sm:$0xff]  }
  0x73   :  { %1779 = vmatpush1.bf16.msra.mxu1 %v3226_v29  ;;  %1739 = vmatprep.subr.bf16.mxu0 %v3231_v30  ;;  %v3316_v29 = vld [vmem:[#allocation4 + $0x28c] ss:$16 sps:$4 sm:$0xff]   ;;  %v3311_v30 = vld [vmem:[#allocation4 + $0x88] ss:$16 sps:$4 sm:$0xff]  }
  0x74   :  { %1780 = vmatprep.subr.bf16.mxu1 %v3234_v31  ;;  %v3314_v31 = vld [vmem:[#allocation4 + $0x288] ss:$16 sps:$4 sm:$0xff]  }
  0x76   :  { %1740 = vmatpush1.bf16.msra.mxu0 %v3229_v34  ;;  %v3317_v34 = vld [vmem:[#allocation4 + $0x68] ss:$16 sps:$4 sm:$0xff]  }
  0x77   :  { %1781 = vmatpush1.bf16.msra.mxu1 %v3232_v35  ;;  %1741 = vmatprep.subr.bf16.mxu0 %v3237_v38  ;;  %v3328_v35 = vld [vmem:[#allocation4 + $0x24c] ss:$16 sps:$4 sm:$0xff]   ;;  %v3323_v38 = vld [vmem:[#allocation4 + $0x48] ss:$16 sps:$4 sm:$0xff]  }
  0x78   :  { %1782 = vmatprep.subr.bf16.mxu1 %v3240_v39  ;;  %v3326_v39 = vld [vmem:[#allocation4 + $0x248] ss:$16 sps:$4 sm:$0xff]  }
  0x7a   :  { %1742 = vmatpush1.bf16.msra.mxu0 %v3235_v40  ;;  %v3331_v40 = vld [vmem:[#allocation4 + $0x2c] ss:$16 sps:$4 sm:$0xff]  }
  0x7b   :  { %1783 = vmatpush1.bf16.msra.mxu1 %v3238_v41  ;;  %1743 = vmatprep.subr.bf16.mxu0 %v3243_v42  ;;  %v3334_v41 = vld [vmem:[#allocation4 + $0x22c] ss:$16 sps:$4 sm:$0xff]   ;;  %v3329_v42 = vld [vmem:[#allocation4 + $0x28] ss:$16 sps:$4 sm:$0xff]  }
  0x7c   :  { %1784 = vmatprep.subr.bf16.mxu1 %v3246_v43  ;;  %v3332_v43 = vld [vmem:[#allocation4 + $0x228] ss:$16 sps:$4 sm:$0xff]  }
  0x7e   :  { %1744 = vmatpush2.bf16.msra.mxu0 %v3241_v44  ;;  %v3337_v44 = vld [vmem:[#allocation4 + $0xc] ss:$16 sps:$4 sm:$0xff]  }
  0x7f   :  { %1785 = vmatpush2.bf16.msra.mxu1 %v3244_v45  ;;  %1745 = vmatprep.subr.bf16.mxu0 %v3249_v46  ;;  %v3340_v45 = vld [vmem:[#allocation4 + $0x20c] ss:$16 sps:$4 sm:$0xff]   ;;  %v3335_v46 = vld [vmem:[#allocation4 + $0x8] ss:$16 sps:$4 sm:$0xff]  }
  0x80   :  { %1786 = vmatprep.subr.bf16.mxu1 %v3252_v48  ;;  %v3338_v48 = vld [vmem:[#allocation4 + $0x208] ss:$16 sps:$4 sm:$0xff]  }
  0x82   :  { %1746 = vmatpush2.bf16.msra.mxu0 %v3247_v49  ;;  %v3343_v49 = vld [vmem:[#allocation4 + $0x1ec] ss:$16 sps:$4 sm:$0xff]  }
  0x83   :  { %1787 = vmatpush2.bf16.msra.mxu1 %v3250_v50  ;;  %1747 = vmatprep.subr.bf16.mxu0 %v3255_v52  ;;  %v3346_v50 = vld [vmem:[#allocation4 + $0x3ec] ss:$16 sps:$4 sm:$0xff]   ;;  %v3341_v52 = vld [vmem:[#allocation4 + $0x1e8] ss:$16 sps:$4 sm:$0xff]  }
  0x84   :  { %1788 = vmatprep.subr.bf16.mxu1 %v3258_v53  ;;  %v3344_v53 = vld [vmem:[#allocation4 + $0x3e8] ss:$16 sps:$4 sm:$0xff]  }
  0x86   :  { %1748 = vmatpush2.bf16.msra.mxu0 %v3253_v54  ;;  %v3349_v54 = vld [vmem:[#allocation4 + $0x1cc] ss:$16 sps:$4 sm:$0xff]  }
  0x87   :  { %1789 = vmatpush2.bf16.msra.mxu1 %v3256_v55  ;;  %1749 = vmatprep.subr.bf16.mxu0 %v3261_v56  ;;  %v3352_v55 = vld [vmem:[#allocation4 + $0x3cc] ss:$16 sps:$4 sm:$0xff]   ;;  %v3347_v56 = vld [vmem:[#allocation4 + $0x1c8] ss:$16 sps:$4 sm:$0xff]  }
  0x88   :  { %1790 = vmatprep.subr.bf16.mxu1 %v3264_v57  ;;  %v3350_v57 = vld [vmem:[#allocation4 + $0x3c8] ss:$16 sps:$4 sm:$0xff]  }
  0x8a   :  { %1750 = vmatpush2.bf16.msra.mxu0 %v3259_v58  ;;  %v3355_v58 = vld [vmem:[#allocation4 + $0x1ac] ss:$16 sps:$4 sm:$0xff]  }
  0x8b   :  { %1791 = vmatpush2.bf16.msra.mxu1 %v3262_v59  ;;  %1751 = vmatprep.subr.bf16.mxu0 %v3267_v60  ;;  %v3358_v59 = vld [vmem:[#allocation4 + $0x3ac] ss:$16 sps:$4 sm:$0xff]   ;;  %v3353_v60 = vld [vmem:[#allocation4 + $0x1a8] ss:$16 sps:$4 sm:$0xff]  }
  0x8c   :  { %1792 = vmatprep.subr.bf16.mxu1 %v3270_v61  ;;  %v3356_v61 = vld [vmem:[#allocation4 + $0x3a8] ss:$16 sps:$4 sm:$0xff]  }
  0x8e   :  { %1752 = vmatpush2.bf16.msra.mxu0 %v3265_v62  ;;  %v3361_v62 = vld [vmem:[#allocation4 + $0x18c] ss:$16 sps:$4 sm:$0xff]  }
  0x8f   :  { %1793 = vmatpush2.bf16.msra.mxu1 %v3268_v63  ;;  %1753 = vmatprep.subr.bf16.mxu0 %v3273_v0  ;;  %v3364_v63 = vld [vmem:[#allocation4 + $0x38c] ss:$16 sps:$4 sm:$0xff]   ;;  %v3359_v0 = vld [vmem:[#allocation4 + $0x188] ss:$16 sps:$4 sm:$0xff]  }
  0x90   :  { %1794 = vmatprep.subr.bf16.mxu1 %v3276_v1  ;;  %v3362_v1 = vld [vmem:[#allocation4 + $0x388] ss:$16 sps:$4 sm:$0xff]  }
  0x92   :  { %1754 = vmatpush2.bf16.msra.mxu0 %v3271_v2  ;;  %v3367_v2 = vld [vmem:[#allocation4 + $0x16c] ss:$16 sps:$4 sm:$0xff]  }
  0x93   :  { %1795 = vmatpush2.bf16.msra.mxu1 %v3274_v3  ;;  %1755 = vmatprep.subr.bf16.mxu0 %v3279_v4  ;;  %v3370_v3 = vld [vmem:[#allocation4 + $0x36c] ss:$16 sps:$4 sm:$0xff]   ;;  %v3365_v4 = vld [vmem:[#allocation4 + $0x168] ss:$16 sps:$4 sm:$0xff]  }
  0x94   :  { %1796 = vmatprep.subr.bf16.mxu1 %v3282_v5  ;;  %v3368_v5 = vld [vmem:[#allocation4 + $0x368] ss:$16 sps:$4 sm:$0xff]  }
  0x96   :  { %1756 = vmatpush2.bf16.msra.mxu0 %v3277_v8  ;;  %v3373_v8 = vld [vmem:[#allocation4 + $0x14c] ss:$16 sps:$4 sm:$0xff]  }
  0x97   :  { %1797 = vmatpush2.bf16.msra.mxu1 %v3280_v9  ;;  %1757 = vmatprep.subr.bf16.mxu0 %v3285_v10  ;;  %v3376_v9 = vld [vmem:[#allocation4 + $0x34c] ss:$16 sps:$4 sm:$0xff]   ;;  %v3371_v10 = vld [vmem:[#allocation4 + $0x148] ss:$16 sps:$4 sm:$0xff]  }
  0x98   :  { %1798 = vmatprep.subr.bf16.mxu1 %v3288_v11  ;;  %v3374_v11 = vld [vmem:[#allocation4 + $0x348] ss:$16 sps:$4 sm:$0xff]  }
  0x9a   :  { %1758 = vmatpush2.bf16.msra.mxu0 %v3283_v12  ;;  %v3379_v12 = vld [vmem:[#allocation4 + $0x12c] ss:$16 sps:$4 sm:$0xff]  }
  0x9b   :  { %1799 = vmatpush2.bf16.msra.mxu1 %v3286_v13  ;;  %1809 = vmatprep.subr.bf16.mxu0 %v3295_v14  ;;  %v3382_v13 = vld [vmem:[#allocation4 + $0x32c] ss:$16 sps:$4 sm:$0xff]   ;;  %v3377_v14 = vld [vmem:[#allocation4 + $0x128] ss:$16 sps:$4 sm:$0xff]  }
  0x9c   :  { %1850 = vmatprep.subr.bf16.mxu1 %v3298_v15  ;;  %v3380_v15 = vld [vmem:[#allocation4 + $0x328] ss:$16 sps:$4 sm:$0xff]  }
  0x9d   :  { %1760 = vmatmul.mubr.bf16.vlgmr.msra.gmra.mxu0 %v3733_v16 }
  0x9e   :  { %1801 = vmatmul.mubr.bf16.vlgmr.msra.gmra.mxu1 %v3737_v17  ;;  %1810 = vmatpush1.bf16.msra.mxu0 %v3293_v18  ;;  %v3385_v18 = vld [vmem:[#allocation4 + $0x10c] ss:$16 sps:$4 sm:$0xff]  }
  0x9f   :  { %1851 = vmatpush1.bf16.msra.mxu1 %v3296_v19  ;;  %1811 = vmatprep.subr.bf16.mxu0 %v3301_v20  ;;  %v3388_v19 = vld [vmem:[#allocation4 + $0x30c] ss:$16 sps:$4 sm:$0xff]   ;;  %v3383_v20 = vld [vmem:[#allocation4 + $0x108] ss:$16 sps:$4 sm:$0xff]  }
  0xa0   :  { %1852 = vmatprep.subr.bf16.mxu1 %v3304_v21  ;;  %1841 = vmatprep.mubr.bf16.mxu0 %v3696_v47  ;;  %v3320_v47 = vld [vmem:[#allocation4 + $0x268] ss:$16 sps:$4 sm:$0xff]  }
  0xa1   :  { %1882 = vmatprep.mubr.bf16.mxu1 %v3701_v51  ;;  %v3325_v51 = vld [vmem:[#allocation4 + $0x4c] ss:$16 sps:$4 sm:$0xff]   ;;  %v3386_v21 = vld [vmem:[#allocation4 + $0x308] ss:$16 sps:$4 sm:$0xff]  }
  0xa2   :  { %1812 = vmatpush1.bf16.msra.mxu0 %v3299_v22  ;;  %v3391_v22 = vld [vmem:[#allocation4 + $0x4ec] ss:$16 sps:$4 sm:$0xff]  }
  0xa3   :  { %1853 = vmatpush1.bf16.msra.mxu1 %v3302_v23  ;;  %1813 = vmatprep.subr.bf16.mxu0 %v3307_v24  ;;  %v3394_v23 = vld [vmem:[#allocation4 + $0x6ec] ss:$16 sps:$4 sm:$0xff]   ;;  %v3389_v24 = vld [vmem:[#allocation4 + $0x4e8] ss:$16 sps:$4 sm:$0xff]  }
  0xa4   :  { %1854 = vmatprep.subr.bf16.mxu1 %v3310_v25  ;;  %v3392_v25 = vld [vmem:[#allocation4 + $0x6e8] ss:$16 sps:$4 sm:$0xff]  }
  0xa6   :  { %1814 = vmatpush1.bf16.msra.mxu0 %v3305_v26  ;;  %v3397_v26 = vld [vmem:[#allocation4 + $0x4cc] ss:$16 sps:$4 sm:$0xff]  }
  0xa7   :  { %1855 = vmatpush1.bf16.msra.mxu1 %v3308_v27  ;;  %1815 = vmatprep.subr.bf16.mxu0 %v3313_v28  ;;  %v3400_v27 = vld [vmem:[#allocation4 + $0x6cc] ss:$16 sps:$4 sm:$0xff]   ;;  %v3395_v28 = vld [vmem:[#allocation4 + $0x4c8] ss:$16 sps:$4 sm:$0xff]  }
  0xa8   :  { %1856 = vmatprep.subr.bf16.mxu1 %v3316_v29  ;;  %v3398_v29 = vld [vmem:[#allocation4 + $0x6c8] ss:$16 sps:$4 sm:$0xff]  }
  0xaa   :  { %1816 = vmatpush1.bf16.msra.mxu0 %v3311_v30  ;;  %v3403_v30 = vld [vmem:[#allocation4 + $0x4ac] ss:$16 sps:$4 sm:$0xff]  }
  0xab   :  { %1857 = vmatpush1.bf16.msra.mxu1 %v3314_v31  ;;  %1817 = vmatprep.subr.bf16.mxu0 %v3319_v32  ;;  %v3406_v31 = vld [vmem:[#allocation4 + $0x6ac] ss:$16 sps:$4 sm:$0xff]   ;;  %v3401_v32 = vld [vmem:[#allocation4 + $0x4a8] ss:$16 sps:$4 sm:$0xff]  }
  0xac   :  { %1858 = vmatprep.subr.bf16.mxu1 %v3322_v33  ;;  %v3404_v33 = vld [vmem:[#allocation4 + $0x6a8] ss:$16 sps:$4 sm:$0xff]  }
  0xae   :  { %1818 = vmatpush1.bf16.msra.mxu0 %v3317_v34  ;;  %v3409_v34 = vld [vmem:[#allocation4 + $0x48c] ss:$16 sps:$4 sm:$0xff]  }
  0xaf   :  { %1859 = vmatpush1.bf16.msra.mxu1 %v3320_v47  ;;  %1819 = vmatprep.subr.bf16.mxu0 %v3325_v51  ;;  %v3412_v47 = vld [vmem:[#allocation4 + $0x68c] ss:$16 sps:$4 sm:$0xff]  }
  0xb0   :  { %1860 = vmatprep.subr.bf16.mxu1 %v3328_v35  ;;  %v3415_v51 = vld [vmem:[#allocation4 + $0x46c] ss:$16 sps:$4 sm:$0xff]  }
  0xb1   :  { %v3418_v35 = vld [vmem:[#allocation4 + $0x66c] ss:$16 sps:$4 sm:$0xff]  }
  0xb2   :  { %1820 = vmatpush1.bf16.msra.mxu0 %v3323_v38  ;;  %v3413_v38 = vld [vmem:[#allocation4 + $0x468] ss:$16 sps:$4 sm:$0xff]  }
  0xb3   :  { %1861 = vmatpush1.bf16.msra.mxu1 %v3326_v39  ;;  %1821 = vmatprep.subr.bf16.mxu0 %v3331_v40  ;;  %v3416_v39 = vld [vmem:[#allocation4 + $0x668] ss:$16 sps:$4 sm:$0xff]   ;;  %v3421_v40 = vld [vmem:[#allocation4 + $0x44c] ss:$16 sps:$4 sm:$0xff]  }
  0xb4   :  { %1862 = vmatprep.subr.bf16.mxu1 %v3334_v41  ;;  %v3422_v41 = vld [vmem:[#allocation4 + $0x648] ss:$16 sps:$4 sm:$0xff]  }
  0xb6   :  { %1822 = vmatpush1.bf16.msra.mxu0 %v3329_v42  ;;  %v3427_v42 = vld [vmem:[#allocation4 + $0x42c] ss:$16 sps:$4 sm:$0xff]  }
  0xb7   :  { %1863 = vmatpush1.bf16.msra.mxu1 %v3332_v43  ;;  %1823 = vmatprep.subr.bf16.mxu0 %v3337_v44  ;;  %v3430_v43 = vld [vmem:[#allocation4 + $0x62c] ss:$16 sps:$4 sm:$0xff]   ;;  %v3425_v44 = vld [vmem:[#allocation4 + $0x428] ss:$16 sps:$4 sm:$0xff]  }
  0xb8   :  { %1864 = vmatprep.subr.bf16.mxu1 %v3340_v45  ;;  %v3428_v45 = vld [vmem:[#allocation4 + $0x628] ss:$16 sps:$4 sm:$0xff]  }
  0xba   :  { %1824 = vmatpush1.bf16.msra.mxu0 %v3335_v46  ;;  %v3433_v46 = vld [vmem:[#allocation4 + $0x40c] ss:$16 sps:$4 sm:$0xff]  }
  0xbb   :  { %1865 = vmatpush1.bf16.msra.mxu1 %v3338_v48  ;;  %1825 = vmatprep.subr.bf16.mxu0 %v3343_v49  ;;  %v3436_v48 = vld [vmem:[#allocation4 + $0x60c] ss:$16 sps:$4 sm:$0xff]   ;;  %v3431_v49 = vld [vmem:[#allocation4 + $0x408] ss:$16 sps:$4 sm:$0xff]  }
  0xbc   :  { %1866 = vmatprep.subr.bf16.mxu1 %v3346_v50  ;;  %v3434_v50 = vld [vmem:[#allocation4 + $0x608] ss:$16 sps:$4 sm:$0xff]  }
  0xbe   :  { %1826 = vmatpush2.bf16.msra.mxu0 %v3341_v52  ;;  %v3439_v52 = vld [vmem:[#allocation4 + $0x5ec] ss:$16 sps:$4 sm:$0xff]  }
  0xbf   :  { %1867 = vmatpush2.bf16.msra.mxu1 %v3344_v53  ;;  %1827 = vmatprep.subr.bf16.mxu0 %v3349_v54  ;;  %v3442_v53 = vld [vmem:[#allocation4 + $0x7ec] ss:$16 sps:$4 sm:$0xff]   ;;  %v3437_v54 = vld [vmem:[#allocation4 + $0x5e8] ss:$16 sps:$4 sm:$0xff]  }
  0xc0   :  { %1868 = vmatprep.subr.bf16.mxu1 %v3352_v55  ;;  %v3440_v55 = vld [vmem:[#allocation4 + $0x7e8] ss:$16 sps:$4 sm:$0xff]  }
  0xc2   :  { %1828 = vmatpush2.bf16.msra.mxu0 %v3347_v56  ;;  %v3445_v56 = vld [vmem:[#allocation4 + $0x5cc] ss:$16 sps:$4 sm:$0xff]  }
  0xc3   :  { %1869 = vmatpush2.bf16.msra.mxu1 %v3350_v57  ;;  %1829 = vmatprep.subr.bf16.mxu0 %v3355_v58  ;;  %v3448_v57 = vld [vmem:[#allocation4 + $0x7cc] ss:$16 sps:$4 sm:$0xff]   ;;  %v3443_v58 = vld [vmem:[#allocation4 + $0x5c8] ss:$16 sps:$4 sm:$0xff]  }
  0xc4   :  { %1870 = vmatprep.subr.bf16.mxu1 %v3358_v59  ;;  %v3446_v59 = vld [vmem:[#allocation4 + $0x7c8] ss:$16 sps:$4 sm:$0xff]  }
  0xc6   :  { %1830 = vmatpush2.bf16.msra.mxu0 %v3353_v60  ;;  %v3451_v60 = vld [vmem:[#allocation4 + $0x5ac] ss:$16 sps:$4 sm:$0xff]  }
  0xc7   :  { %1871 = vmatpush2.bf16.msra.mxu1 %v3356_v61  ;;  %1831 = vmatprep.subr.bf16.mxu0 %v3361_v62  ;;  %v3454_v61 = vld [vmem:[#allocation4 + $0x7ac] ss:$16 sps:$4 sm:$0xff]   ;;  %v3449_v62 = vld [vmem:[#allocation4 + $0x5a8] ss:$16 sps:$4 sm:$0xff]  }
  0xc8   :  { %1872 = vmatprep.subr.bf16.mxu1 %v3364_v63  ;;  %v3452_v63 = vld [vmem:[#allocation4 + $0x7a8] ss:$16 sps:$4 sm:$0xff]  }
  0xca   :  { %1832 = vmatpush2.bf16.msra.mxu0 %v3359_v0  ;;  %v3457_v0 = vld [vmem:[#allocation4 + $0x58c] ss:$16 sps:$4 sm:$0xff]  }
  0xcb   :  { %1873 = vmatpush2.bf16.msra.mxu1 %v3362_v1  ;;  %1833 = vmatprep.subr.bf16.mxu0 %v3367_v2  ;;  %v3460_v1 = vld [vmem:[#allocation4 + $0x78c] ss:$16 sps:$4 sm:$0xff]   ;;  %v3455_v2 = vld [vmem:[#allocation4 + $0x588] ss:$16 sps:$4 sm:$0xff]  }
  0xcc   :  { %1874 = vmatprep.subr.bf16.mxu1 %v3370_v3  ;;  %v3458_v3 = vld [vmem:[#allocation4 + $0x788] ss:$16 sps:$4 sm:$0xff]  }
  0xce   :  { %1834 = vmatpush2.bf16.msra.mxu0 %v3365_v4  ;;  %v3463_v4 = vld [vmem:[#allocation4 + $0x56c] ss:$16 sps:$4 sm:$0xff]  }
  0xcf   :  { %1875 = vmatpush2.bf16.msra.mxu1 %v3368_v5  ;;  %1835 = vmatprep.subr.bf16.mxu0 %v3373_v8  ;;  %v3466_v5 = vld [vmem:[#allocation4 + $0x76c] ss:$16 sps:$4 sm:$0xff]   ;;  %v3461_v8 = vld [vmem:[#allocation4 + $0x568] ss:$16 sps:$4 sm:$0xff]  }
  0xd0   :  { %1876 = vmatprep.subr.bf16.mxu1 %v3376_v9  ;;  %v3464_v9 = vld [vmem:[#allocation4 + $0x768] ss:$16 sps:$4 sm:$0xff]  }
  0xd2   :  { %1836 = vmatpush2.bf16.msra.mxu0 %v3371_v10  ;;  %v3469_v10 = vld [vmem:[#allocation4 + $0x54c] ss:$16 sps:$4 sm:$0xff]  }
  0xd3   :  { %1877 = vmatpush2.bf16.msra.mxu1 %v3374_v11  ;;  %1837 = vmatprep.subr.bf16.mxu0 %v3379_v12  ;;  %v3472_v11 = vld [vmem:[#allocation4 + $0x74c] ss:$16 sps:$4 sm:$0xff]   ;;  %v3467_v12 = vld [vmem:[#allocation4 + $0x548] ss:$16 sps:$4 sm:$0xff]  }
  0xd4   :  { %1878 = vmatprep.subr.bf16.mxu1 %v3382_v13  ;;  %v3470_v13 = vld [vmem:[#allocation4 + $0x748] ss:$16 sps:$4 sm:$0xff]  }
  0xd6   :  { %1838 = vmatpush2.bf16.msra.mxu0 %v3377_v14  ;;  %v3475_v14 = vld [vmem:[#allocation4 + $0x52c] ss:$16 sps:$4 sm:$0xff]  }
  0xd7   :  { %1879 = vmatpush2.bf16.msra.mxu1 %v3380_v15  ;;  %1839 = vmatprep.subr.bf16.mxu0 %v3385_v18  ;;  %v3478_v15 = vld [vmem:[#allocation4 + $0x72c] ss:$16 sps:$4 sm:$0xff]   ;;  %v3473_v18 = vld [vmem:[#allocation4 + $0x528] ss:$16 sps:$4 sm:$0xff]  }
  0xd8   :  { %1880 = vmatprep.subr.bf16.mxu1 %v3388_v19  ;;  %v3476_v19 = vld [vmem:[#allocation4 + $0x728] ss:$16 sps:$4 sm:$0xff]  }
  0xda   :  { %1840 = vmatpush2.bf16.msra.mxu0 %v3383_v20  ;;  %v3481_v20 = vld [vmem:[#allocation4 + $0x50c] ss:$16 sps:$4 sm:$0xff]  }
  0xdb   :  { %1881 = vmatpush2.bf16.msra.mxu1 %v3386_v21  ;;  %1891 = vmatprep.subr.bf16.mxu0 %v3391_v22  ;;  %v3484_v21 = vld [vmem:[#allocation4 + $0x70c] ss:$16 sps:$4 sm:$0xff]   ;;  %v3479_v22 = vld [vmem:[#allocation4 + $0x508] ss:$16 sps:$4 sm:$0xff]  }
  0xdc   :  { %1932 = vmatprep.subr.bf16.mxu1 %v3394_v23  ;;  %v3482_v23 = vld [vmem:[#allocation4 + $0x708] ss:$16 sps:$4 sm:$0xff]  }
  0xdd   :  { %1842 = vmatmul.mubr.bf16.vlgmr.msra.gmra.mxu0 %v3705_v6  ;;  %v3407_v6 = vld [vmem:[#allocation4 + $0x488] ss:$16 sps:$4 sm:$0xff]  }
  0xde   :  { %1883 = vmatmul.mubr.bf16.vlgmr.msra.gmra.mxu1 %v3707_v7  ;;  %1892 = vmatpush1.bf16.msra.mxu0 %v3389_v24  ;;  %v3410_v7 = vld [vmem:[#allocation4 + $0x688] ss:$16 sps:$4 sm:$0xff]   ;;  %v3487_v24 = vld [vmem:[#allocation6 + $0x74] ss:$8 sps:$4 sm:$0xff]  }
  0xdf   :  { %1933 = vmatpush1.bf16.msra.mxu1 %v3392_v25  ;;  %1893 = vmatprep.subr.bf16.mxu0 %v3397_v26  ;;  %v3485_v25 = vld [vmem:[#allocation6 + $0x70] ss:$8 sps:$4 sm:$0xff]   ;;  %v3490_v26 = vld [vmem:[#allocation6 + $0x64] ss:$8 sps:$4 sm:$0xff]  }
  0xe0   :  { %1934 = vmatprep.subr.bf16.mxu1 %v3400_v27  ;;  %1923 = vmatprep.mubr.bf16.mxu0 %v3723_v36  ;;  %v3424_v36 = vld [vmem:[#allocation4 + $0x64c] ss:$16 sps:$4 sm:$0xff]  }
  0xe1   :  { %1964 = vmatprep.mubr.bf16.mxu1 %v3727_v37  ;;  %v3419_v37 = vld [vmem:[#allocation4 + $0x448] ss:$16 sps:$4 sm:$0xff]  }
  0xe2   :  { %1894 = vmatpush1.bf16.msra.mxu0 %v3395_v28 }
  0xe3   :  { %1935 = vmatpush1.bf16.msra.mxu1 %v3398_v29  ;;  %1895 = vmatprep.subr.bf16.mxu0 %v3403_v30  ;;  %v3488_v29 = vld [vmem:[#allocation6 + $0x60] ss:$8 sps:$4 sm:$0xff]  }
  0xe4   :  { %1936 = vmatprep.subr.bf16.mxu1 %v3406_v31 }
  0xe6   :  { %1896 = vmatpush1.bf16.msra.mxu0 %v3401_v32  ;;  %v3493_v32 = vld [vmem:[#allocation6 + $0x54] ss:$8 sps:$4 sm:$0xff]  }
  0xe7   :  { %1937 = vmatpush1.bf16.msra.mxu1 %v3404_v33  ;;  %1897 = vmatprep.subr.bf16.mxu0 %v3409_v34 }
  0xe8   :  { %1938 = vmatprep.subr.bf16.mxu1 %v3412_v47  ;;  %v3491_v47 = vld [vmem:[#allocation6 + $0x50] ss:$8 sps:$4 sm:$0xff]  }
  0xea   :  { %1898 = vmatpush1.bf16.msra.mxu0 %v3407_v6 }
  0xeb   :  { %1939 = vmatpush1.bf16.msra.mxu1 %v3410_v7  ;;  %1899 = vmatprep.subr.bf16.mxu0 %v3415_v51  ;;  %v3496_v51 = vld [vmem:[#allocation6 + $0x44] ss:$8 sps:$4 sm:$0xff]  }
  0xec   :  { %1940 = vmatprep.subr.bf16.mxu1 %v3418_v35  ;;  %v3533_v35 = vld [vmem:[#allocation6 + $0x170] ss:$8 sps:$4 sm:$0xff]  }
  0xee   :  { %1900 = vmatpush1.bf16.msra.mxu0 %v3413_v38  ;;  %v3538_v38 = vld [vmem:[#allocation6 + $0x164] ss:$8 sps:$4 sm:$0xff]  }
  0xef   :  { %1941 = vmatpush1.bf16.msra.mxu1 %v3416_v39  ;;  %1901 = vmatprep.subr.bf16.mxu0 %v3421_v40  ;;  %v3536_v39 = vld [vmem:[#allocation6 + $0x160] ss:$8 sps:$4 sm:$0xff]   ;;  %v3499_v40 = vld [vmem:[#allocation6 + $0x34] ss:$8 sps:$4 sm:$0xff]  }
  0xf0   :  { %1942 = vmatprep.subr.bf16.mxu1 %v3424_v36  ;;  %v3541_v36 = vld [vmem:[#allocation6 + $0x154] ss:$8 sps:$4 sm:$0xff]  }
  0xf2   :  { %1902 = vmatpush1.bf16.msra.mxu0 %v3419_v37  ;;  %v3497_v37 = vld [vmem:[#allocation6 + $0x30] ss:$8 sps:$4 sm:$0xff]  }
  0xf3   :  { %1943 = vmatpush1.bf16.msra.mxu1 %v3422_v41  ;;  %1903 = vmatprep.subr.bf16.mxu0 %v3427_v42  ;;  %v3539_v41 = vld [vmem:[#allocation6 + $0x150] ss:$8 sps:$4 sm:$0xff]   ;;  %v3502_v42 = vld [vmem:[#allocation6 + $0x24] ss:$8 sps:$4 sm:$0xff]  }
  0xf4   :  { %1944 = vmatprep.subr.bf16.mxu1 %v3430_v43  ;;  %v3544_v43 = vld [vmem:[#allocation6 + $0x144] ss:$8 sps:$4 sm:$0xff]  }
  0xf6   :  { %1904 = vmatpush1.bf16.msra.mxu0 %v3425_v44  ;;  %v3500_v44 = vld [vmem:[#allocation6 + $0x20] ss:$8 sps:$4 sm:$0xff]  }
  0xf7   :  { %1945 = vmatpush1.bf16.msra.mxu1 %v3428_v45  ;;  %1905 = vmatprep.subr.bf16.mxu0 %v3433_v46  ;;  %v3542_v45 = vld [vmem:[#allocation6 + $0x140] ss:$8 sps:$4 sm:$0xff]   ;;  %v3505_v46 = vld [vmem:[#allocation6 + $0x14] ss:$8 sps:$4 sm:$0xff]  }
  0xf8   :  { %1946 = vmatprep.subr.bf16.mxu1 %v3436_v48  ;;  %v3547_v48 = vld [vmem:[#allocation6 + $0x134] ss:$8 sps:$4 sm:$0xff]  }
  0xfa   :  { %1906 = vmatpush1.bf16.msra.mxu0 %v3431_v49  ;;  %v3503_v49 = vld [vmem:[#allocation6 + $0x10] ss:$8 sps:$4 sm:$0xff]  }
  0xfb   :  { %1947 = vmatpush1.bf16.msra.mxu1 %v3434_v50  ;;  %1907 = vmatprep.subr.bf16.mxu0 %v3439_v52  ;;  %v3545_v50 = vld [vmem:[#allocation6 + $0x130] ss:$8 sps:$4 sm:$0xff]   ;;  %v3508_v52 = vld [vmem:[#allocation6 + $0x4] ss:$8 sps:$4 sm:$0xff]  }
  0xfc   :  { %1948 = vmatprep.subr.bf16.mxu1 %v3442_v53  ;;  %v3550_v53 = vld [vmem:[#allocation6 + $0x124] ss:$8 sps:$4 sm:$0xff]  }
  0xfe   :  { %1908 = vmatpush2.bf16.msra.mxu0 %v3437_v54  ;;  %v3506_v54 = vld [vmem:[#allocation6] ss:$8 sps:$4 sm:$0xff]  }
  0xff   :  { %1949 = vmatpush2.bf16.msra.mxu1 %v3440_v55  ;;  %1909 = vmatprep.subr.bf16.mxu0 %v3445_v56  ;;  %v3548_v55 = vld [vmem:[#allocation6 + $0x120] ss:$8 sps:$4 sm:$0xff]   ;;  %v3511_v56 = vld [vmem:[#allocation6 + $0xf4] ss:$8 sps:$4 sm:$0xff]  }
 0x100   :  { %1950 = vmatprep.subr.bf16.mxu1 %v3448_v57  ;;  %v3553_v57 = vld [vmem:[#allocation6 + $0x114] ss:$8 sps:$4 sm:$0xff]  }
 0x102   :  { %1910 = vmatpush2.bf16.msra.mxu0 %v3443_v58  ;;  %v3509_v58 = vld [vmem:[#allocation6 + $0xf0] ss:$8 sps:$4 sm:$0xff]  }
 0x103   :  { %1951 = vmatpush2.bf16.msra.mxu1 %v3446_v59  ;;  %1911 = vmatprep.subr.bf16.mxu0 %v3451_v60  ;;  %v3551_v59 = vld [vmem:[#allocation6 + $0x110] ss:$8 sps:$4 sm:$0xff]   ;;  %v3514_v60 = vld [vmem:[#allocation6 + $0xe4] ss:$8 sps:$4 sm:$0xff]  }
 0x104   :  { %1952 = vmatprep.subr.bf16.mxu1 %v3454_v61  ;;  %v3556_v61 = vld [vmem:[#allocation6 + $0x104] ss:$8 sps:$4 sm:$0xff]  }
 0x106   :  { %1912 = vmatpush2.bf16.msra.mxu0 %v3449_v62  ;;  %v3512_v62 = vld [vmem:[#allocation6 + $0xe0] ss:$8 sps:$4 sm:$0xff]  }
 0x107   :  { %1953 = vmatpush2.bf16.msra.mxu1 %v3452_v63  ;;  %1913 = vmatprep.subr.bf16.mxu0 %v3457_v0  ;;  %v3554_v63 = vld [vmem:[#allocation6 + $0x100] ss:$8 sps:$4 sm:$0xff]   ;;  %v3517_v0 = vld [vmem:[#allocation6 + $0xd4] ss:$8 sps:$4 sm:$0xff]  }
 0x108   :  { %1954 = vmatprep.subr.bf16.mxu1 %v3460_v1  ;;  %v3559_v1 = vld [vmem:[#allocation6 + $0x1f4] ss:$8 sps:$4 sm:$0xff]  }
 0x10a   :  { %1914 = vmatpush2.bf16.msra.mxu0 %v3455_v2  ;;  %v3515_v2 = vld [vmem:[#allocation6 + $0xd0] ss:$8 sps:$4 sm:$0xff]  }
 0x10b   :  { %1955 = vmatpush2.bf16.msra.mxu1 %v3458_v3  ;;  %1915 = vmatprep.subr.bf16.mxu0 %v3463_v4  ;;  %v3557_v3 = vld [vmem:[#allocation6 + $0x1f0] ss:$8 sps:$4 sm:$0xff]   ;;  %v3520_v4 = vld [vmem:[#allocation6 + $0xc4] ss:$8 sps:$4 sm:$0xff]  }
 0x10c   :  { %1956 = vmatprep.subr.bf16.mxu1 %v3466_v5  ;;  %v3562_v5 = vld [vmem:[#allocation6 + $0x1e4] ss:$8 sps:$4 sm:$0xff]  }
 0x10e   :  { %1916 = vmatpush2.bf16.msra.mxu0 %v3461_v8  ;;  %v3518_v8 = vld [vmem:[#allocation6 + $0xc0] ss:$8 sps:$4 sm:$0xff]  }
 0x10f   :  { %1957 = vmatpush2.bf16.msra.mxu1 %v3464_v9  ;;  %1917 = vmatprep.subr.bf16.mxu0 %v3469_v10  ;;  %v3560_v9 = vld [vmem:[#allocation6 + $0x1e0] ss:$8 sps:$4 sm:$0xff]   ;;  %v3523_v10 = vld [vmem:[#allocation6 + $0xb4] ss:$8 sps:$4 sm:$0xff]  }
 0x110   :  { %1958 = vmatprep.subr.bf16.mxu1 %v3472_v11  ;;  %v3565_v11 = vld [vmem:[#allocation6 + $0x1d4] ss:$8 sps:$4 sm:$0xff]  }
 0x112   :  { %1918 = vmatpush2.bf16.msra.mxu0 %v3467_v12  ;;  %v317_v12 = vlaneseq }
 0x113   :  { %1959 = vmatpush2.bf16.msra.mxu1 %v3470_v13  ;;  %1919 = vmatprep.subr.bf16.mxu0 %v3475_v14  ;;  %v3521_v13 = vld [vmem:[#allocation6 + $0xb0] ss:$8 sps:$4 sm:$0xff]  }
 0x114   :  { %1960 = vmatprep.subr.bf16.mxu1 %v3478_v15  ;;  %v3563_v14 = vld [vmem:[#allocation6 + $0x1d0] ss:$8 sps:$4 sm:$0xff]   ;;  %v3526_v15 = vld [vmem:[#allocation6 + $0xa4] ss:$8 sps:$4 sm:$0xff]  }
 0x116   :  { %1920 = vmatpush2.bf16.msra.mxu0 %v3473_v18  ;;  %v3568_v18 = vld [vmem:[#allocation6 + $0x1c4] ss:$8 sps:$4 sm:$0xff]  }
 0x117   :  { %1961 = vmatpush2.bf16.msra.mxu1 %v3476_v19  ;;  %1921 = vmatprep.subr.bf16.mxu0 %v3481_v20  ;;  %v3757_v19 = vshrl.u32 %v317_v12, 7  ;;  %v3524_v20 = vld [vmem:[#allocation6 + $0xa0] ss:$8 sps:$4 sm:$0xff]   ;;  %v3590_v12 = vld [vmem:[%s3846_s5 + $0x18] sm:$0xff]  }
 0x118   :  { %1962 = vmatprep.subr.bf16.mxu1 %v3484_v21  ;;  %v3566_v21 = vld [vmem:[#allocation6 + $0x1c0] ss:$8 sps:$4 sm:$0xff]  }
 0x11a   :  { %1922 = vmatpush2.bf16.msra.mxu0 %v3479_v22  ;;  %v3529_v22 = vld [vmem:[#allocation6 + $0x94] ss:$8 sps:$4 sm:$0xff]  }
 0x11b   :  { %1963 = vmatpush2.bf16.msra.mxu1 %v3482_v23  ;;  %2415 = vmatprep.subr.bf16.mxu0 %v3487_v24  ;;  %v3571_v23 = vld [vmem:[#allocation6 + $0x1b4] ss:$8 sps:$4 sm:$0xff]   ;;  %v319_v24 = vsub.s32 0, %v3757_v19 }
 0x11d   :  { %v3747_v27 = vpop.f32.mrf.mxu0  ;;  %1924 = vmatmul.mubr.bf16.vlgmr.msra.gmra.mxu0 %v3733_v16  ;;  %v3535_v16 = vld [vmem:[#allocation6 + $0x174] ss:$8 sps:$4 sm:$0xff]  }
 0x11e   :  { %v3749_v28 = vpop.f32.mrf.mxu1  ;;  %1965 = vmatmul.mubr.bf16.vlgmr.msra.gmra.mxu1 %v3737_v17  ;;  %2416 = vmatpush1.bf16.msra.mxu0 %v3485_v25  ;;  %v3494_v17 = vld [vmem:[#allocation6 + $0x40] ss:$8 sps:$4 sm:$0xff]  }
 0x11f   :  { %v3753_v30 = vpop.f32.mrf.mxu0  ;;  %2417 = vmatprep.subr.bf16.mxu0 %v3490_v26  ;;  %2456 = vmatprep.subr.bf16.mxu1 %v3535_v16  ;;  %v3763_v25 = vld [vmem:[%s3843_s2] sm:$0xf]  ;;  %v323_v26 = vsub.s32 1, %v3757_v19  ;;  %v3574_v16 = vld [vmem:[#allocation6 + $0x1a4] ss:$8 sps:$4 sm:$0xff]  }
 0x120   :  { %v3755_v31 = vpop.f32.mrf.mxu1  ;;  %2457 = vmatpush1.bf16.msra.mxu1 %v3533_v35 }
 0x121   :  { %v1683_v33 = vpop.f32.mrf.mxu0  ;;  %2458 = vmatprep.subr.bf16.mxu1 %v3538_v38 }
 0x122   :  { %v1724_v34 = vpop.f32.mrf.mxu1  ;;  %2418 = vmatpush1.bf16.msra.mxu0 %v3488_v29  ;;  %v3527_v29 = vld [vmem:[#allocation6 + $0x90] ss:$8 sps:$4 sm:$0xff]   ;;  %v3532_v33 = vld [vmem:[#allocation6 + $0x84] ss:$8 sps:$4 sm:$0xff]  }
 0x123   :  { %v1684_v6 = vpop.f32.mrf.mxu0  ;;  %2419 = vmatprep.subr.bf16.mxu0 %v3493_v32  ;;  %v3569_v32 = vld [vmem:[#allocation6 + $0x1b0] ss:$8 sps:$4 sm:$0xff]   ;;  %v320_v34 = vrot.slane %v3763_v25, %v319_v24 }
 0x124   :  { %v1725_v7 = vpop.f32.mrf.mxu1  ;;  %2459 = vmatpush1.bf16.msra.mxu1 %v3536_v39  ;;  %v3530_v6 = vld [vmem:[#allocation6 + $0x80] ss:$8 sps:$4 sm:$0xff]  }
 0x125   :  { %2460 = vmatprep.subr.bf16.mxu1 %v3541_v36  ;;  %v1680_v7 = vadd.f32 %v3747_v27, %v320_v34  ;;  %v3572_v39 = vld [vmem:[#allocation6 + $0x1a0] ss:$8 sps:$4 sm:$0xff]  }
 0x126   :  { %2420 = vmatpush1.bf16.msra.mxu0 %v3491_v47  ;;  %v324_v47 = vrot.slane %v3763_v25, %v323_v26 }
 0x127   :  { %2421 = vmatprep.subr.bf16.mxu0 %v3496_v51  ;;  %v1721_v35 = vadd.f32 %v3749_v28, %v1680_v7 }
 0x128   :  { %2461 = vmatpush1.bf16.msra.mxu1 %v3539_v41  ;;  %v1682_v51 = vadd.f32 %v3753_v30, %v324_v47  ;;  %v3575_v30 = vld [vmem:[#allocation6 + $0x190] ss:$8 sps:$4 sm:$0xff]  }
 0x129   :  { %2462 = vmatprep.subr.bf16.mxu1 %v3544_v43 }
 0x12a   :  { %2422 = vmatpush1.bf16.msra.mxu0 %v3494_v17 }
 0x12b   :  { %2423 = vmatprep.subr.bf16.mxu0 %v3499_v40  ;;  %v1723_v40 = vadd.f32 %v3755_v31, %v1682_v51 }
 0x12c   :  { %2463 = vmatpush1.bf16.msra.mxu1 %v3542_v45 }
 0x12d   :  { %2464 = vmatprep.subr.bf16.mxu1 %v3547_v48 }
 0x12e   :  { %2424 = vmatpush1.bf16.msra.mxu0 %v3497_v37 }
 0x12f   :  { %2425 = vmatprep.subr.bf16.mxu0 %v3502_v42 }
 0x130   :  { %2465 = vmatpush1.bf16.msra.mxu1 %v3545_v50  ;;  %v3580_v50 = vld [vmem:[#allocation6 + $0x184] ss:$8 sps:$4 sm:$0xff]  }
 0x131   :  { %2466 = vmatprep.subr.bf16.mxu1 %v3550_v53  ;;  %v3578_v53 = vld [vmem:[#allocation6 + $0x180] ss:$8 sps:$4 sm:$0xff]  }
 0x132   :  { %2426 = vmatpush1.bf16.msra.mxu0 %v3500_v44  ;;  %v3577_v44 = vld [vmem:[#allocation6 + $0x194] ss:$8 sps:$4 sm:$0xff]  }
 0x133   :  { %2427 = vmatprep.subr.bf16.mxu0 %v3505_v46 }
 0x134   :  { %2467 = vmatpush1.bf16.msra.mxu1 %v3548_v55 }
 0x135   :  { %2468 = vmatprep.subr.bf16.mxu1 %v3553_v57 }
 0x136   :  { %2428 = vmatpush1.bf16.msra.mxu0 %v3503_v49 }
 0x137   :  { %2429 = vmatprep.subr.bf16.mxu0 %v3508_v52 }
 0x138   :  { %2469 = vmatpush1.bf16.msra.mxu1 %v3551_v59 }
 0x139   :  { %2470 = vmatprep.subr.bf16.mxu1 %v3556_v61 }
 0x13a   :  { %2430 = vmatpush1.bf16.msra.mxu0 %v3506_v54 }
 0x13b   :  { %2431 = vmatprep.subr.bf16.mxu0 %v3511_v56 }
 0x13c   :  { %2471 = vmatpush1.bf16.msra.mxu1 %v3554_v63 }
 0x13d   :  { %2472 = vmatprep.subr.bf16.mxu1 %v3559_v1  ;;  %v3581_v1 = vld [vmem:[%s3846_s5 + $0x78] sm:$0xff]  }
 0x13e   :  { %2432 = vmatpush2.bf16.msra.mxu0 %v3509_v58 }
 0x13f   :  { %2433 = vmatprep.subr.bf16.mxu0 %v3514_v60 }
 0x140   :  { %2473 = vmatpush2.bf16.msra.mxu1 %v3557_v3  ;;  %v3583_v3 = vld [vmem:[%s3846_s5 + $0x70] sm:$0xff]  }
 0x141   :  { %2474 = vmatprep.subr.bf16.mxu1 %v3562_v5  ;;  %v3585_v5 = vld [vmem:[%s3846_s5 + $0x68] sm:$0xff]  }
 0x142   :  { %2434 = vmatpush2.bf16.msra.mxu0 %v3512_v62 }
 0x143   :  { %2435 = vmatprep.subr.bf16.mxu0 %v3517_v0 }
 0x144   :  { %2475 = vmatpush2.bf16.msra.mxu1 %v3560_v9  ;;  %v3587_v9 = vld [vmem:[%s3846_s5 + $0x60] sm:$0xff]  }
 0x145   :  { %2476 = vmatprep.subr.bf16.mxu1 %v3565_v11  ;;  %v3589_v11 = vld [vmem:[%s3846_s5 + $0x58] sm:$0xff]  }
 0x146   :  { %2436 = vmatpush2.bf16.msra.mxu0 %v3515_v2  ;;  %v3582_v2 = vld [vmem:[%s3846_s5 + $0x38] sm:$0xff]  }
 0x147   :  { %2437 = vmatprep.subr.bf16.mxu0 %v3520_v4  ;;  %v3584_v4 = vld [vmem:[%s3846_s5 + $0x30] sm:$0xff]  }
 0x148   :  { %2477 = vmatpush2.bf16.msra.mxu1 %v3563_v14  ;;  %v327_v14 = vsub.s32 2, %v3757_v19 }
 0x149   :  { %2478 = vmatprep.subr.bf16.mxu1 %v3568_v18 }
 0x14a   :  { %2438 = vmatpush2.bf16.msra.mxu0 %v3518_v8  ;;  %v3586_v8 = vld [vmem:[%s3846_s5 + $0x28] sm:$0xff]   ;;  %v328_v18 = vrot.slane %v3763_v25, %v327_v14 }
 0x14b   :  { %2439 = vmatprep.subr.bf16.mxu0 %v3523_v10  ;;  %v3588_v10 = vld [vmem:[%s3846_s5 + $0x20] sm:$0xff]  }
 0x14c   :  { %2479 = vmatpush2.bf16.msra.mxu1 %v3566_v21 }
 0x14d   :  { %2480 = vmatprep.subr.bf16.mxu1 %v3571_v23 }
 0x14e   :  { %2440 = vmatpush2.bf16.msra.mxu0 %v3521_v13  ;;  %v3591_v13 = vld [vmem:[%s3846_s5 + $0x50] sm:$0xff]  }
 0x14f   :  { %2441 = vmatprep.subr.bf16.mxu0 %v3526_v15  ;;  %v331_v15 = vsub.s32 3, %v3757_v19 }
 0x150   :  { %2481 = vmatpush2.bf16.msra.mxu1 %v3569_v32 }
 0x151   :  { %2482 = vmatprep.subr.bf16.mxu1 %v3574_v16 }
 0x152   :  { %2442 = vmatpush2.bf16.msra.mxu0 %v3524_v20  ;;  %v332_v20 = vrot.slane %v3763_v25, %v331_v15 }
 0x153   :  { %2443 = vmatprep.subr.bf16.mxu0 %v3529_v22 }
 0x154   :  { %2483 = vmatpush2.bf16.msra.mxu1 %v3572_v39 }
 0x155   :  { %2484 = vmatprep.subr.bf16.mxu1 %v3577_v44 }
 0x156   :  { %2444 = vmatpush2.bf16.msra.mxu0 %v3527_v29 }
 0x157   :  { %2445 = vmatprep.subr.bf16.mxu0 %v3532_v33 }
 0x158   :  { %2485 = vmatpush2.bf16.msra.mxu1 %v3575_v30  ;;  %v3594_v30 = vld [vmem:[%s3846_s5 + $0x8] sm:$0xff]  }
 0x159   :  { %2486 = vmatprep.subr.bf16.mxu1 %v3580_v50 }
 0x15a   :  { %2446 = vmatpush2.bf16.msra.mxu0 %v3530_v6 }
 0x15b   :  { %3065 = vmatprep.subr.bf16.mxu0 %v3581_v1 }
 0x15c   :  { %2487 = vmatpush2.bf16.msra.mxu1 %v3578_v53 }
 0x15d   :  { %v1761_v38 = vpop.f32.mrf.mxu0 }
 0x15e   :  { %v1802_v17 = vpop.f32.mrf.mxu1  ;;  %v1762_v36 = vadd.f32 %v1761_v38, %v1721_v35 }
 0x15f   :  { %v1763_v37 = vpop.f32.mrf.mxu0 }
 0x160   :  { %v1804_v41 = vpop.f32.mrf.mxu1  ;;  %v1803_v42 = vadd.f32 %v1802_v17, %v1762_v36  ;;  %v1764_v43 = vadd.f32 %v1763_v37, %v1723_v40 }
 0x161   :  { %v1765_v27 = vpop.f32.mrf.mxu0 }
 0x162   :  { %v1806_v45 = vpop.f32.mrf.mxu1  ;;  %vm1973_vm0 = vcmp.gt.f32.partialorder %v1803_v42, 0.0  ;;  %v1977_v46 = vmul.f32 0.2, %v1803_v42  ;;  %v1805_v28 = vadd.f32 %v1804_v41, %v1764_v43  ;;  %v3592_v43 = vld [vmem:[%s3846_s5 + $0x10] sm:$0xff]   ;;  %v3593_v27 = vld [vmem:[%s3846_s5 + $0x48] sm:$0xff]  }
 0x163   :  { %v1766_v48 = vpop.f32.mrf.mxu0 }
 0x164   :  { %v1807_v49 = vpop.f32.mrf.mxu1  ;;  %vm1974_vm1 = vcmp.gt.f32.partialorder %v1805_v28, 0.0  ;;  %v1978_v31 = vmul.f32 0.2, %v1805_v28  ;;  %v1981_v52 = vsel %vm1973_vm0, %v1803_v42, %v1977_v46 }
 0x165   :  { %v3059_v56 = vpack.c.bf16 %v1981_v52, %v1981_v52  ;;  %v3596_v49 = vld [vmem:[%s3846_s5] sm:$0xff]  }
 0x166   :  { %v1982_v54 = vsel %vm1974_vm1, %v1805_v28, %v1978_v31  ;;  %v3595_v28 = vld [vmem:[%s3846_s5 + $0x40] sm:$0xff]  }
 0x167   :  { %v3060_v55 = vpack.c.bf16 %v1982_v54, %v1982_v54  ;;  %v2069_v31 = vld [vmem:[%s3845_s4] sm:$0x3] }
 0x168   :  { %v2074_v50 = vrot.slane %v2069_v31, %v319_v24  ;;  %v2078_v52 = vrot.slane %v2069_v31, %v323_v26  ;;  %v3037_v24 = vld [vmem:[%s3847_s6] ss:$0 sm:$0xff] }
 0x169   :  { %2447 = vmatprep.mubr.bf16.mxu0 %v3060_v55 }
 0x16a   :  { %2448 = vmatmul.mubr.bf16.vlgmr.msra.gmra.mxu0 %v3059_v56 }
 0x16b   :  { %3066 = vmatpush3.bf16.msra.mxu0 %v3582_v2 }
 0x16c   :  { %3067 = vmatprep.subr.bf16.mxu0 %v3583_v3 }
 0x16f   :  { %3068 = vmatpush3.bf16.msra.mxu0 %v3584_v4 }
 0x170   :  { %3069 = vmatprep.subr.bf16.mxu0 %v3585_v5 }
 0x173   :  { %3070 = vmatpush3.bf16.msra.mxu0 %v3586_v8 }
 0x174   :  { %3071 = vmatprep.subr.bf16.mxu0 %v3587_v9 }
 0x177   :  { %3072 = vmatpush3.bf16.msra.mxu0 %v3588_v10 }
 0x178   :  { %3073 = vmatprep.subr.bf16.mxu0 %v3589_v11 }
 0x17b   :  { %3074 = vmatpush3.bf16.msra.mxu0 %v3590_v12 }
 0x17c   :  { %3075 = vmatprep.subr.bf16.mxu0 %v3591_v13 }
 0x17f   :  { %3076 = vmatpush3.bf16.msra.mxu0 %v3592_v43 }
 0x180   :  { %3077 = vmatprep.subr.bf16.mxu0 %v3593_v27 }
 0x183   :  { %3078 = vmatpush3.bf16.msra.mxu0 %v3594_v30 }
 0x184   :  { %3079 = vmatprep.subr.bf16.mxu0 %v3595_v28 }
 0x187   :  { %3080 = vmatpush3.bf16.msra.mxu0 %v3596_v49 }
 0x19d   :  { %v1843_v57 = vpop.f32.mrf.mxu0 }
 0x19e   :  { %v1884_v58 = vpop.f32.mrf.mxu1  ;;  %v1844_v21 = vadd.f32 %v1843_v57, %v328_v18 }
 0x19f   :  { %v1845_v59 = vpop.f32.mrf.mxu0 }
 0x1a0   :  { %v1886_v60 = vpop.f32.mrf.mxu1  ;;  %v1846_v22 = vadd.f32 %v1845_v59, %v332_v20  ;;  %v1885_v23 = vadd.f32 %v1884_v58, %v1844_v21 }
 0x1a1   :  { %v1847_v61 = vpop.f32.mrf.mxu0 }
 0x1a2   :  { %v1888_v62 = vpop.f32.mrf.mxu1  ;;  %v1887_v33 = vadd.f32 %v1886_v60, %v1846_v22 }
 0x1a3   :  { %v1848_v63 = vpop.f32.mrf.mxu0 }
 0x1a4   :  { %v1889_v0 = vpop.f32.mrf.mxu1 }
 0x1dd   :  { %v1925_v29 = vpop.f32.mrf.mxu0 }
 0x1de   :  { %v1966_v32 = vpop.f32.mrf.mxu1  ;;  %v1926_v34 = vadd.f32 %v1925_v29, %v1885_v23 }
 0x1df   :  { %v1927_v47 = vpop.f32.mrf.mxu0 }
 0x1e0   :  { %v1968_v6 = vpop.f32.mrf.mxu1  ;;  %v1967_v7 = vadd.f32 %v1966_v32, %v1926_v34  ;;  %v1928_v51 = vadd.f32 %v1927_v47, %v1887_v33 }
 0x1e1   :  { %v1929_v35 = vpop.f32.mrf.mxu0 }
 0x1e2   :  { %v1970_v16 = vpop.f32.mrf.mxu1  ;;  %vm1975_vm2 = vcmp.gt.f32.partialorder %v1967_v7, 0.0  ;;  %v1979_v38 = vmul.f32 0.2, %v1967_v7  ;;  %v1969_v17 = vadd.f32 %v1968_v6, %v1928_v51 }
 0x1e3   :  { %v1930_v39 = vpop.f32.mrf.mxu0 }
 0x1e4   :  { %v1971_v40 = vpop.f32.mrf.mxu1  ;;  %vm1976_vm3 = vcmp.gt.f32.partialorder %v1969_v17, 0.0  ;;  %v1980_v25 = vmul.f32 0.2, %v1969_v17  ;;  %v1983_v36 = vsel %vm1975_vm2, %v1967_v7, %v1979_v38 }
 0x1e5   :  { %v3061_v42 = vpack.c.bf16 %v1983_v36, %v1983_v36 }
 0x1e6   :  { %v1984_v37 = vsel %vm1976_vm3, %v1969_v17, %v1980_v25 }
 0x1e7   :  { %v3062_v41 = vpack.c.bf16 %v1984_v37, %v1984_v37 }
 0x1e9   :  { %2488 = vmatprep.mubr.bf16.mxu1 %v3062_v41 }
 0x1ea   :  { %2489 = vmatmul.mubr.bf16.vlgmr.msra.gmra.mxu1 %v3061_v42 }
 0x22a   :  { %v2449_v44 = vpop.f32.mrf.mxu0 }
 0x22b   :  { %v2450_v53 = vadd.f32 %v2449_v44, %v2074_v50 }
 0x22c   :  { %v2451_v45 = vpop.f32.mrf.mxu0 }
 0x22d   :  { %v2452_v55 = vadd.f32 %v2451_v45, %v2078_v52 }
 0x22e   :  { %v2453_v46 = vpop.f32.mrf.mxu0 }
 0x230   :  { %v2454_v48 = vpop.f32.mrf.mxu0 }
 0x2aa   :  { %v2490_v54 = vpop.f32.mrf.mxu1 }
 0x2ab   :  { %v2491_v56 = vadd.f32 %v2490_v54, %v2450_v53 }
 0x2ac   :  { %v2492_v57 = vpop.f32.mrf.mxu1 }
 0x2ad   :  { %vm2497_vm4 = vcmp.gt.f32.partialorder %v2491_v56, 0.0  ;;  %v2499_v58 = vmul.f32 0.2, %v2491_v56  ;;  %v2493_v59 = vadd.f32 %v2492_v57, %v2452_v55 }
 0x2ae   :  { %v2494_v60 = vpop.f32.mrf.mxu1 }
 0x2af   :  { %vm2498_vm5 = vcmp.gt.f32.partialorder %v2493_v59, 0.0  ;;  %v2500_v61 = vmul.f32 0.2, %v2493_v59  ;;  %v2501_v62 = vsel %vm2497_vm4, %v2491_v56, %v2499_v58 }
 0x2b0   :  { %v2495_v63 = vpop.f32.mrf.mxu1  ;;  %v3063_v2 = vpack.c.bf16 %v2501_v62, %v2501_v62 }
 0x2b1   :  { %v2502_v0 = vsel %vm2498_vm5, %v2493_v59, %v2500_v61 }
 0x2b2   :  { %v3064_v1 = vpack.c.bf16 %v2502_v0, %v2502_v0 }
 0x2b4   :  { %2687 = vmatprep.mubr.bf16.mxu0 %v3064_v1 }
 0x2b5   :  { %2688 = vmatmul.mubr.bf16.vlgmr.msra.gmra.mxu0 %v3063_v2 }
 0x375   :  { %v3081_v19 = vpop.f32.mrf.mxu0 }
 0x377   :  { %v3082_v26 = vpop.f32.mrf.mxu0 }
 0x378   :  { %v3083_v3 = vadd.f32 %v3082_v26, %v3081_v19 }
 0x379   :  { %v3084_v4 = vpop.f32.mrf.mxu0 }
 0x37a   :  { %v2690_v5 = vadd.f32 %v3083_v3, %v3037_v24 }
 0x37b   :  { %v3085_v8 = vpop.f32.mrf.mxu0 }
 0x37c   :  { %2695 = vst [vmem:[%s3848_s7] sm:$0xff] %v2690_v5 }
 0x37d   :  { %2700 = vsyncpa [#allocation5], 1 }
 0x37e   :  { %2701 = vsyncpa [#allocation7], 1 }

</bundles_post_ra>
